<compile_context>
chip_gen: v6e
topology: v6e:2x2x1
jax: 0.10.0
libtpu: 0.0.40
codegen_flags: <defaults>
</compile_context>

<pallas_src>
import math

import jax
import jax.numpy as jnp
from jax.experimental import pallas as pl
from jax.experimental.pallas import tpu as pltpu


def _round_up(a, b):
    return ((a + b - 1) // b) * b


def _chip_defaults():
    """Per-TPU-generation defaults: (tm, vmem_cap_bytes, generation tag)."""
    try:
        kind = jax.devices()[0].device_kind.lower()
    except Exception:
        kind = ""
    if "v7" in kind or "7x" in kind:
        # 2 TCs, 64 MiB VMEM/TC, ~3.2 TB/s HBM: tm>=384 clears the MXU break-even,
        # cap well below physical VMEM to leave room for compiler scratch.
        return 384, 52 << 20, "v7"
    if "v6" in kind:
        # 128 MiB VMEM, ~1.4 TB/s HBM: needs tm>=512 to be MXU-bound.
        return 512, 100 << 20, "v6"
    if "v5" in kind:
        return 256, 100 << 20, "v5"
    return 256, 64 << 20, "unknown"


# ---------------------------------------------------------------------------
# Kernels
# ---------------------------------------------------------------------------
def swiglu_kernel_resident(x_ref, w12_ref, w3_ref, o_ref):
    """Single hidden tile (weights fully resident): one grid step per row tile.

    x_ref:   (tm, E)      activation row tile
    w12_ref: (E, 2*H)     fused [gate | value] projection (constant block)
    w3_ref:  (H, E)       output projection (constant block)
    o_ref:   (tm, E)      output row tile
    """
    th = w3_ref.shape[0]
    h12 = jnp.dot(x_ref[...], w12_ref[...], preferred_element_type=jnp.float32)
    h1 = h12[:, :th]                        # gate branch (lane-aligned)
    h2 = h12[:, th:]                        # value branch
    gated = (h1 * jax.nn.sigmoid(h1)) * h2  # swish(h1) * h2 in f32 (VPU/EUP)
    o_ref[...] = jnp.dot(gated.astype(w3_ref.dtype), w3_ref[...],
                         preferred_element_type=jnp.float32).astype(o_ref.dtype)


def swiglu_kernel_streamed(x_ref, w12_ref, w3_ref, o_ref, acc_ref):
    """Hidden axis streamed in tiles: grid = (row tiles, hidden tiles).

    x_ref:   (tm, E)      activation row tile (constant along the h axis)
    w12_ref: (E, 2*th)    fused [gate | value] tile for hidden block h
    w3_ref:  (th, E)      output projection tile for hidden block h
    o_ref:   (tm, E)      output row tile (written on the last hidden step)
    acc_ref: (tm, E) f32  VMEM accumulator, resident across the hidden axis
    """
    h = pl.program_id(1)
    th = w3_ref.shape[0]

    h12 = jnp.dot(x_ref[...], w12_ref[...], preferred_element_type=jnp.float32)
    h1 = h12[:, :th]
    h2 = h12[:, th:]
    gated = (h1 * jax.nn.sigmoid(h1)) * h2
    partial = jnp.dot(gated.astype(w3_ref.dtype), w3_ref[...],
                      preferred_element_type=jnp.float32)

    @pl.when(h == 0)
    def _first():           # direct assign: no zero-init write + read
        acc_ref[...] = partial

    @pl.when(h > 0)
    def _rest():
        acc_ref[...] += partial

    @pl.when(h == pl.num_programs(1) - 1)
    def _finalize():
        o_ref[...] = acc_ref[...].astype(o_ref.dtype)


# ---------------------------------------------------------------------------
# Weight packing (call ONCE at parameter load; not in the forward hot path)
# ---------------------------------------------------------------------------
def pack_swiglu_weights(w1, w2, w3, *, th=None, compute_dtype=jnp.bfloat16,
                        resident_weight_bytes=24 << 20):
    """w1, w2: (emb, hidden); w3: (hidden, emb) -> fused, padded, tiled weights.

    Weights are stored as (in_features, out_features), i.e. the transpose of
    torch's nn.Linear weight, so the kernel computes plain `x @ W`.
    """
    emb, hidden = w1.shape
    assert w2.shape == (emb, hidden) and w3.shape == (hidden, emb)

    E_p = _round_up(emb, 128)
    H_p = _round_up(hidden, 128)           # pad hidden to 128 first (min padding)
    b_cd = jnp.dtype(compute_dtype).itemsize

    if th is None:
        if 3 * E_p * H_p * b_cd <= resident_weight_bytes:
            th = H_p                        # whole expert stays VMEM-resident
        else:
            th = next(t for t in (512, 384, 256, 128) if H_p % t == 0)
    else:
        th = _round_up(min(th, H_p), 128)
        if H_p % th != 0:                   # th must divide padded hidden
            th = next(t for t in (512, 384, 256, 128) if H_p % t == 0)
    n_h = H_p // th

    w1_p = jnp.zeros((E_p, H_p), compute_dtype).at[:emb, :hidden].set(
        w1.astype(compute_dtype))
    w2_p = jnp.zeros((E_p, H_p), compute_dtype).at[:emb, :hidden].set(
        w2.astype(compute_dtype))
    # Fuse gate+value weights so hidden tile h is one rectangular (E_p, 2*th)
    # block: columns [h*2*th : h*2*th+th] = w1 tile h, next th columns = w2 tile h.
    w12_p = jnp.concatenate(
        [w1_p.reshape(E_p, n_h, th), w2_p.reshape(E_p, n_h, th)],
        axis=2).reshape(E_p, 2 * H_p)
    w3_p = jnp.zeros((H_p, E_p), compute_dtype).at[:hidden, :emb].set(
        w3.astype(compute_dtype))

    meta = dict(emb=emb, hidden=hidden, E_p=E_p, H_p=H_p, th=th, n_h=n_h,
                compute_dtype=compute_dtype)
    return w12_p, w3_p, meta


# ---------------------------------------------------------------------------
# Forward (hot path) — takes pre-packed weights
# ---------------------------------------------------------------------------
def swiglu_expert_moe_packed(x, w12_p, w3_p, meta, *, tm=None, out_dtype=None,
                             vmem_cap_bytes=None):
    """x: (batch, seq, emb). Returns (batch, seq, emb) in `out_dtype`
    (defaults to the compute dtype, bf16, to halve output HBM writeback)."""
    batch, seq, emb = x.shape
    assert emb == meta["emb"]
    compute_dtype = meta["compute_dtype"]
    E_p, H_p, th, n_h = meta["E_p"], meta["H_p"], meta["th"], meta["n_h"]
    out_dtype = compute_dtype if out_dtype is None else out_dtype
    b_cd = jnp.dtype(compute_dtype).itemsize
    b_out = jnp.dtype(out_dtype).itemsize
    M = batch * seq

    # ---- per-generation row tile + VMEM cap ----
    tm_default, cap_default, kind = _chip_defaults()
    if tm is None:
        tm = tm_default
    if vmem_cap_bytes is None:
        vmem_cap_bytes = cap_default

    tm = max(16, _round_up(min(tm, M), 16))          # bf16 sublane packing: x16 rows
    if kind == "v7" and M >= 256:
        # 2 TensorCores share the "parallel" row axis -> keep >= 2 row tiles.
        tm = min(tm, _round_up(-(-M // 2), 16))

    def _vmem_estimate(tm_):
        x_bufs = 1 if (n_h > 1 and tm_ * E_p * b_cd >= (4 << 20)) else 2
        return (x_bufs * tm_ * E_p * b_cd            # x row tiles
                + 2 * tm_ * E_p * b_out              # double-buffered output tiles
                + 2 * (E_p * 2 * th + th * E_p) * b_cd   # W12 + W3 tiles
                + (tm_ * E_p * 4 if n_h > 1 else 0)  # f32 accumulator
                + tm_ * 3 * th * 4)                  # f32 h12 + gated temporaries

    # Auto-shrink tm so the working set stays under the per-chip cap.
    while tm > 64 and _vmem_estimate(tm) * 1.4 + (6 << 20) > vmem_cap_bytes:
        tm = max(64, _round_up(tm // 2, 16))

    single_buffer_x = (n_h > 1) and (tm * E_p * b_cd >= (4 << 20))
    M_p = _round_up(M, tm)
    n_row = M_p // tm

    # ---- pad activations only (weights are pre-packed) ----
    x2d = x.reshape(M, emb).astype(compute_dtype)
    if M_p != M or E_p != emb:
        x_p = jnp.zeros((M_p, E_p), compute_dtype).at[:M, :emb].set(x2d)
    else:
        x_p = x2d

    # ---- scheduler hint ----
    weight_bytes = 3 * E_p * H_p * b_cd
    cost = pl.CostEstimate(
        flops=6 * M_p * E_p * H_p,
        transcendentals=M_p * H_p,
        bytes_accessed=int(M_p * E_p * b_cd
                           + (weight_bytes * n_row if n_h > 1 else weight_bytes)
                           + M_p * E_p * b_out),
    )
    vmem_limit = int(min(max(_vmem_estimate(tm) * 1.4 + (6 << 20), 32 << 20),
                         vmem_cap_bytes))

    if n_h == 1:
        # Weights fully resident: 1-D grid over row tiles, constant weight block
        # index (fetched once), direct output write (no accumulator scratch).
        grid = (n_row,)
        in_specs = [
            pl.BlockSpec((tm, E_p), lambda i: (i, 0)),        # x rows
            pl.BlockSpec((E_p, 2 * th), lambda i: (0, 0)),    # fused W1|W2 (resident)
            pl.BlockSpec((th, E_p), lambda i: (0, 0)),        # W3 (resident)
        ]
        out_specs = pl.BlockSpec((tm, E_p), lambda i: (i, 0))
        scratch = []
        kernel = swiglu_kernel_resident
        dims = ("parallel",)
    else:
        # Hidden axis streamed; x tile is constant along h -> optionally
        # single-buffer it to reclaim VMEM for bigger tm.
        x_kwargs = {"pipeline_mode": pl.Buffered(1)} if single_buffer_x else {}
        grid = (n_row, n_h)
        in_specs = [
            pl.BlockSpec((tm, E_p), lambda i, h: (i, 0), **x_kwargs),
            pl.BlockSpec((E_p, 2 * th), lambda i, h: (0, h)),
            pl.BlockSpec((th, E_p), lambda i, h: (h, 0)),
        ]
        out_specs = pl.BlockSpec((tm, E_p), lambda i, h: (i, 0))
        scratch = [pltpu.VMEM((tm, E_p), jnp.float32)]
        kernel = swiglu_kernel_streamed
        dims = ("parallel", "arbitrary")

    out_p = pl.pallas_call(
        kernel,
        out_shape=jax.ShapeDtypeStruct((M_p, E_p), out_dtype),
        grid_spec=pltpu.PrefetchScalarGridSpec(
            num_scalar_prefetch=0,
            grid=grid,
            in_specs=in_specs,
            out_specs=out_specs,
            scratch_shapes=scratch,
        ),
        compiler_params=pltpu.CompilerParams(
            dimension_semantics=dims,
            vmem_limit_bytes=vmem_limit,
        ),
        cost_estimate=cost,
    )(x_p, w12_p, w3_p)

    return out_p[:M, :emb].reshape(batch, seq, emb)


def swiglu_expert_moe(x, w1, w2, w3, *, th=None, tm=None,
                      compute_dtype=jnp.bfloat16, out_dtype=None):
    """Convenience one-shot wrapper (packs weights per call — prefer packing once
    with pack_swiglu_weights and calling swiglu_expert_moe_packed)."""
    w12_p, w3_p, meta = pack_swiglu_weights(w1, w2, w3, th=th,
                                            compute_dtype=compute_dtype)
    return swiglu_expert_moe_packed(x, w12_p, w3_p, meta, tm=tm,
                                    out_dtype=out_dtype)


# ---------------------------------------------------------------------------
# Reference & init
# ---------------------------------------------------------------------------
def reference_swiglu(x, w1, w2, w3):
    """Pure-JAX f32 reference mirroring the PyTorch forward."""
    h1 = x @ w1
    h2 = x @ w2
    swish = h1 * jax.nn.sigmoid(h1)
    return (swish * h2) @ w3


def init_params(key, emb):
    """Deterministic init mimicking nn.Linear's kaiming-uniform (bias-free)."""
    hidden = emb * 2 * 4 // 3
    k1, k2, k3 = jax.random.split(key, 3)
    b1 = 1.0 / math.sqrt(emb)     # linear_layer1/2 fan_in = emb
    b3 = 1.0 / math.sqrt(hidden)  # linear_layer3 fan_in = hidden
    # stored as (in, out) == transpose of torch's (out, in) weight
    w1 = jax.random.uniform(k1, (emb, hidden), jnp.float32, -b1, b1)
    w2 = jax.random.uniform(k2, (emb, hidden), jnp.float32, -b1, b1)
    w3 = jax.random.uniform(k3, (hidden, emb), jnp.float32, -b3, b3)
    return w1, w2, w3


if __name__ == "__main__":
    # Small shapes consistent with the module: (batch, seq, emb), hidden = emb*8//3.
    # TODO(synk): only the SWiGLUExpertMoE expert FFN is a Pallas kernel here; the
    # MoE top-k routing, MLA attention and full DeepSeekV3 graph are out of scope.
    batch, seq, emb = 2, 128, 128          # hidden = 128*2*4//3 = 341 (padded to 384)
    key = jax.random.PRNGKey(0)
    kx, kp = jax.random.split(key)

    x = jax.random.normal(kx, (batch, seq, emb), jnp.float32)
    w1, w2, w3 = init_params(kp, emb)
    ref = reference_swiglu(x, w1, w2, w3)

    # bf16 fast path: weights packed ONCE (hoisted out of the hot path); at this
    # size they are fully VMEM-resident -> single-pass kernel.
    w12_p, w3_p, meta = pack_swiglu_weights(w1, w2, w3)
    out = jax.block_until_ready(swiglu_expert_moe_packed(x, w12_p, w3_p, meta))
    assert out.shape == (batch, seq, emb)
    rel_err = float(jnp.max(jnp.abs(out.astype(jnp.float32) - ref))
                    / (jnp.max(jnp.abs(ref)) + 1e-6))
    assert rel_err < 3e-2, f"bf16 path mismatch vs reference: rel_err={rel_err}"

    # Second call reuses the already-packed weights (no per-call repacking).
    out2 = jax.block_until_ready(swiglu_expert_moe_packed(x, w12_p, w3_p, meta))
    assert jnp.array_equal(out, out2)

    # f32 path with forced hidden-axis streaming (th=128 -> 3 hidden tiles)
    # validates the tiled accumulator kernel exactly.
    w12_f, w3_f, meta_f = pack_swiglu_weights(w1, w2, w3, th=128,
                                              compute_dtype=jnp.float32)
    out_f32 = jax.block_until_ready(
        swiglu_expert_moe_packed(x, w12_f, w3_f, meta_f, tm=128,
                                 out_dtype=jnp.float32))
    assert jnp.allclose(out_f32, ref, atol=1e-4, rtol=1e-4), "f32 path mismatch"

    print("KERNEL_OK")
</pallas_src>

<mosaic_0001>
module attributes {stable_mosaic.version = 11 : i64} {
  func.func @swiglu_kernel_resident(%arg0: i32, %arg1: memref<256x128xbf16, #tpu.memory_space<vmem>>, %arg2: memref<128x768xbf16, #tpu.memory_space<vmem>>, %arg3: memref<384x128xbf16, #tpu.memory_space<vmem>>, %arg4: memref<256x128xbf16, #tpu.memory_space<vmem>>) attributes {dimension_semantics = [#tpu.dimension_semantics<parallel>], iteration_bounds = array<i64: 1>, scalar_prefetch = 0 : i64, scratch_operands = 0 : i64, tpu.core_type = #tpu.core_type<tc>, window_params = [{transform_indices = @transform_0, window_bounds = array<i64: 256, 128>}, {pipeline_mode = #tpu.pipeline_mode<synchronous>, transform_indices = @transform_1, window_bounds = array<i64: 128, 768>}, {pipeline_mode = #tpu.pipeline_mode<synchronous>, transform_indices = @transform_2, window_bounds = array<i64: 384, 128>}, {transform_indices = @transform_3, window_bounds = array<i64: 256, 128>}]} {
    %c0 = arith.constant 0 : index
    %c0_0 = arith.constant 0 : index
    %0 = vector.load %arg1[%c0, %c0_0] : memref<256x128xbf16, #tpu.memory_space<vmem>>, vector<256x128xbf16>
    %c0_1 = arith.constant 0 : index
    %c0_2 = arith.constant 0 : index
    %1 = vector.load %arg2[%c0_1, %c0_2] : memref<128x768xbf16, #tpu.memory_space<vmem>>, vector<128x768xbf16>
    %cst = arith.constant dense<0.000000e+00> : vector<256x768xf32>
    %2 = tpu.matmul %0, %1, %cst {dimension_numbers = #tpu.dot_dimension_numbers<[1], [0], [0], [1], [0, 0, 1, 1], [], []>} : vector<256x128xbf16>, vector<128x768xbf16>, vector<256x768xf32> -> vector<256x768xf32>
    %3 = vector.extract_strided_slice %2 {offsets = [0, 0], sizes = [256, 384], strides = [1, 1]} : vector<256x768xf32> to vector<256x384xf32>
    %4 = vector.extract_strided_slice %2 {offsets = [0, 384], sizes = [256, 384], strides = [1, 1]} : vector<256x768xf32> to vector<256x384xf32>
    %5 = arith.negf %3 : vector<256x384xf32>
    %6 = math.exp %5 : vector<256x384xf32>
    %cst_3 = arith.constant 1.000000e+00 : f32
    %7 = vector.broadcast %cst_3 : f32 to vector<256x384xf32>
    %8 = arith.addf %7, %6 : vector<256x384xf32>
    %9 = arith.divf %7, %8 : vector<256x384xf32>
    %10 = arith.mulf %3, %9 : vector<256x384xf32>
    %11 = arith.mulf %10, %4 : vector<256x384xf32>
    %12 = arith.truncf %11 : vector<256x384xf32> to vector<256x384xbf16>
    %c0_4 = arith.constant 0 : index
    %c0_5 = arith.constant 0 : index
    %13 = vector.load %arg3[%c0_4, %c0_5] : memref<384x128xbf16, #tpu.memory_space<vmem>>, vector<384x128xbf16>
    %cst_6 = arith.constant dense<0.000000e+00> : vector<256x128xf32>
    %14 = tpu.matmul %12, %13, %cst_6 {dimension_numbers = #tpu.dot_dimension_numbers<[1], [0], [0], [1], [0, 0, 1, 1], [], []>} : vector<256x384xbf16>, vector<384x128xbf16>, vector<256x128xf32> -> vector<256x128xf32>
    %15 = arith.truncf %14 : vector<256x128xf32> to vector<256x128xbf16>
    %c0_7 = arith.constant 0 : index
    %c0_8 = arith.constant 0 : index
    %16 = vector.load %arg4[%c0_7, %c0_8] : memref<256x128xbf16, #tpu.memory_space<vmem>>, vector<256x128xbf16>
    tpu.vector_store %arg4[%c0_7, %c0_8], %15 {strides = array<i32>} : memref<256x128xbf16, #tpu.memory_space<vmem>>, vector<256x128xbf16>,
    return
  }
  func.func @transform_0(%arg0: i32) -> (i32, i32) {
    %c0_i32 = arith.constant 0 : i32
    %c0_i32_0 = arith.constant 0 : i32
    return %arg0, %c0_i32 : i32, i32
  }
  func.func @transform_1(%arg0: i32) -> (i32, i32) {
    %c0_i32 = arith.constant 0 : i32
    %c0_i32_0 = arith.constant 0 : i32
    %c0_i32_1 = arith.constant 0 : i32
    return %c0_i32, %c0_i32_0 : i32, i32
  }
  func.func @transform_2(%arg0: i32) -> (i32, i32) {
    %c0_i32 = arith.constant 0 : i32
    %c0_i32_0 = arith.constant 0 : i32
    %c0_i32_1 = arith.constant 0 : i32
    return %c0_i32, %c0_i32_0 : i32, i32
  }
  func.func @transform_3(%arg0: i32) -> (i32, i32) {
    %c0_i32 = arith.constant 0 : i32
    %c0_i32_0 = arith.constant 0 : i32
    return %arg0, %c0_i32 : i32, i32
  }
}

</mosaic_0001>

<bundles_post_ra>
// kernel: tpu_custom_call.1
= control target key start
LH: loop header
LB: loop body
LE: loop exit
PB: predicated region body
PF: predicated region fallthrough
CT: control target
= control target key end

     0   :  { %8 = vsyncpa [#allocation3], 0  ;;  %s4596_s0 = inlined_call_operand.hbm [shape: bf16[256,128], index: 0, kind: input, shape index: {}]   ;;  %s4597_s1 = inlined_call_operand.hbm [shape: bf16[128,768], index: 1, kind: input, shape index: {}]   ;;  %s4598_s2 = inlined_call_operand.hbm [shape: bf16[384,128], index: 2, kind: input, shape index: {}]   ;;  %s4599_s3 = inlined_call_operand.hbm [shape: bf16[256,128], index: 3, kind: output, shape index: {}]  }
   0x1   :  { %9 = vsyncpa [#allocation6], 0 }
   0x2   :  { %10 = vsyncpa [#allocation4], 0  ;;  %s3694_s12 = smov [#allocation5]  }
   0x3   :  { %s28_s13 = sshll.u32 %s3694_s12, 4  ;;  %s29_s13 = int_to_ptr.vmem [resolvable:$true] %s28_s13 }
   0x4   :  { %s3616_s14 = scalar_lea.vmem %s29_s13, 6144  ;;  %p3621_p1 = scmp.lt.s32.totalorder %s29_s13, %s29_s13 }
   0x5   :  { %p3617_p0 = scmp.ne.s32.totalorder %s29_s13, %s3616_s14  ;;  %p3622_p2 = scmp.lt.s32.totalorder %s3616_s14, %s3616_s14 }
   0x7   :  { %p3623_p3 = por %p3622_p2, %p3621_p1 }
   0x9   :  { %p3624_p4 = pnand %p3623_p3, %p3617_p0 }
   0xb   :  { %3627 = shalt.err (!%p3624_p4)
}
   0xc   :  { %s3695_s15 = smov 384   ;;  %s3696_s16 = smov 24  }
   0xd   :  { %34 = dma.hbm_to_vmem [thread:$0]  %s4597_s1, 6144, %s29_s13, [#allocation6], %s3695_s15, %s3695_s15, %s3696_s16  }
   0xe   :  { %s3697_s19 = smov [#allocation2]  }
   0xf   :  { %s16_s20 = sshll.u32 %s3697_s19, 4  ;;  %s17_s20 = int_to_ptr.vmem [resolvable:$true] %s16_s20 }
  0x10   :  { %s3636_s21 = scalar_lea.vmem %s17_s20, 2048  ;;  %p3641_p6 = scmp.lt.s32.totalorder %s17_s20, %s17_s20 }
  0x11   :  { %p3637_p5 = scmp.ne.s32.totalorder %s17_s20, %s3636_s21  ;;  %p3642_p7 = scmp.lt.s32.totalorder %s3636_s21, %s3636_s21 }
  0x13   :  { %p3643_p8 = por %p3642_p7, %p3641_p6 }
  0x15   :  { %p3644_p9 = pnand %p3643_p8, %p3637_p5 }
  0x17   :  { %3647 = shalt.err (!%p3644_p9)
}
  0x18   :  { %s3698_s22 = smov 64   ;;  %s3699_s23 = smov 4  }
  0x19   :  { %22 = dma.hbm_to_vmem [thread:$0]  %s4596_s0, 2048, %s17_s20, [#allocation3], %s3698_s22, %s3698_s22, %s3699_s23  }
  0x1a   :  { %s3700_s1 = smov [#allocation7]  }
  0x1b   :  { %s40_s26 = sshll.u32 %s3700_s1, 4  ;;  %s41_s26 = int_to_ptr.vmem [resolvable:$true] %s40_s26 }
  0x1c   :  { %s3656_s27 = scalar_lea.vmem %s41_s26, 3072  ;;  %p3661_p11 = scmp.lt.s32.totalorder %s41_s26, %s41_s26 }
  0x1d   :  { %p3657_p10 = scmp.ne.s32.totalorder %s41_s26, %s3656_s27  ;;  %p3662_p12 = scmp.lt.s32.totalorder %s3656_s27, %s3656_s27 }
  0x1f   :  { %p3663_p13 = por %p3662_p12, %p3661_p11 }
  0x21   :  { %p3664_p0 = pnand %p3663_p13, %p3657_p10 }
  0x23   :  { %3667 = shalt.err (!%p3664_p0)
}
  0x24   :  { %46 = dma.hbm_to_vmem [thread:$0]  %s4598_s2, 3072, %s41_s26, [#allocation6], %s3698_s22, %s3698_s22, %s3699_s23  }
  0x25   :  { %3688 = dma.done.wait [#allocation3], 2048  }
  0x26   :  { %3689 = vsyncadd [#allocation3], 4294965248 }
  0x27   :  { %3690 = dma.done.wait [#allocation6], 9216  }
  0x28   :  { %3691 = vsyncadd [#allocation6], 4294958080  ;;  %v3701_v0 = vmov 0   ;;  %v3112_v1 = vld [vmem:[#allocation5 + $0x154] ss:$24 sps:$4 sm:$0xff]   ;;  %v3740_v19 = vld [vmem:[#allocation2] sm:$0xff]  }
  0x29   :  { %505 = vmatprep.mubr.bf16.mxu0 %v3701_v0  ;;  %625 = vmatprep.mubr.bf16.mxu1 %v3701_v0  ;;  %v3114_v2 = vld [vmem:[#allocation5 + $0x150] ss:$24 sps:$4 sm:$0xff]   ;;  %v3115_v3 = vld [vmem:[#allocation5 + $0x124] ss:$24 sps:$4 sm:$0xff]   ;;  %v3117_v4 = vld [vmem:[#allocation5 + $0x120] ss:$24 sps:$4 sm:$0xff]  }
  0x2a   :  { %473 = vmatprep.subr.bf16.mxu0 %v3112_v1  ;;  %3087 = vmatprep.subr.bf16.mxu1 %v3112_v1  ;;  %v3118_v5 = vld [vmem:[#allocation5 + $0xf4] ss:$24 sps:$4 sm:$0xff]   ;;  %v3120_v6 = vld [vmem:[#allocation5 + $0xf0] ss:$24 sps:$4 sm:$0xff]   ;;  %v3121_v7 = vld [vmem:[#allocation5 + $0xc4] ss:$24 sps:$4 sm:$0xff]  }
  0x2b   :  { %474 = vmatpush1.bf16.msra.mxu0 %v3114_v2  ;;  %3095 = vmatpush1.bf16.msra.mxu1 %v3114_v2  ;;  %v3123_v8 = vld [vmem:[#allocation5 + $0xc0] ss:$24 sps:$4 sm:$0xff]   ;;  %v3124_v9 = vld [vmem:[#allocation5 + $0x94] ss:$24 sps:$4 sm:$0xff]   ;;  %v3126_v10 = vld [vmem:[#allocation5 + $0x90] ss:$24 sps:$4 sm:$0xff]  }
  0x2c   :  { %475 = vmatprep.subr.bf16.mxu0 %v3115_v3  ;;  %3088 = vmatprep.subr.bf16.mxu1 %v3115_v3  ;;  %v3127_v11 = vld [vmem:[#allocation5 + $0x64] ss:$24 sps:$4 sm:$0xff]   ;;  %v3129_v12 = vld [vmem:[#allocation5 + $0x60] ss:$24 sps:$4 sm:$0xff]   ;;  %v3130_v13 = vld [vmem:[#allocation5 + $0x34] ss:$24 sps:$4 sm:$0xff]  }
  0x2d   :  { %v3132_v14 = vld [vmem:[#allocation5 + $0x30] ss:$24 sps:$4 sm:$0xff]   ;;  %v3133_v15 = vld [vmem:[#allocation5 + $0x4] ss:$24 sps:$4 sm:$0xff]   ;;  %v3135_v16 = vld [vmem:[#allocation5] ss:$24 sps:$4 sm:$0xff]  }
  0x2e   :  { %v3140_v17 = vld [vmem:[#allocation5 + $0x15c] ss:$24 sps:$4 sm:$0xff]   ;;  %v3742_v20 = vld [vmem:[#allocation2 + $0x60] sm:$0xff]   ;;  %v3138_v21 = vld [vmem:[#allocation5 + $0x158] ss:$24 sps:$4 sm:$0xff]   ;;  %s3702_s0 = smov [#allocation8]  }
  0x2f   :  { %476 = vmatpush1.bf16.msra.mxu0 %v3117_v4  ;;  %3096 = vmatpush1.bf16.msra.mxu1 %v3117_v4  ;;  %v3143_v18 = vld [vmem:[#allocation5 + $0x164] ss:$24 sps:$4 sm:$0xff]   ;;  %v3141_v22 = vld [vmem:[#allocation5 + $0x160] ss:$24 sps:$4 sm:$0xff]   ;;  %v3157_v24 = vld [vmem:[#allocation5 + $0x134] ss:$24 sps:$4 sm:$0xff]  }
  0x30   :  { %477 = vmatprep.subr.bf16.mxu0 %v3118_v5  ;;  %3089 = vmatprep.subr.bf16.mxu1 %v3118_v5  ;;  %v3146_v23 = vld [vmem:[#allocation5 + $0x12c] ss:$24 sps:$4 sm:$0xff]   ;;  %v3144_v25 = vld [vmem:[#allocation5 + $0x128] ss:$24 sps:$4 sm:$0xff]   ;;  %v3151_v26 = vld [vmem:[#allocation5 + $0xfc] ss:$24 sps:$4 sm:$0xff]  }
  0x31   :  { %v3155_v27 = vld [vmem:[#allocation5 + $0x130] ss:$24 sps:$4 sm:$0xff]   ;;  %v3173_v28 = vld [vmem:[#allocation5 + $0x104] ss:$24 sps:$4 sm:$0xff]   ;;  %v3171_v33 = vld [vmem:[#allocation5 + $0x100] ss:$24 sps:$4 sm:$0xff]  }
  0x32   :  { %v3748_v29 = vld [vmem:[#allocation2 + $0x8] sm:$0xff]   ;;  %v3149_v31 = vld [vmem:[#allocation5 + $0xf8] ss:$24 sps:$4 sm:$0xff]   ;;  %v3162_v38 = vld [vmem:[#allocation5 + $0x9c] ss:$24 sps:$4 sm:$0xff]   ;;  %s2547_s2 = sshll.u32 %s3702_s0, 4  ;;  %s2548_s2 = int_to_ptr.vmem [resolvable:$true] %s2547_s2 }
  0x33   :  { %478 = vmatpush1.bf16.msra.mxu0 %v3120_v6  ;;  %3097 = vmatpush1.bf16.msra.mxu1 %v3120_v6  ;;  %v3750_v30 = vld [vmem:[#allocation2 + $0x68] sm:$0xff]   ;;  %v3756_v36 = vld [vmem:[#allocation2 + $0x10] sm:$0xff]   ;;  %v3185_v42 = vld [vmem:[#allocation5 + $0xa4] ss:$24 sps:$4 sm:$0xff]   ;;  %s3668_s30 = scalar_lea.vmem %s2548_s2, 2048  ;;  %p3673_p2 = scmp.lt.s32.totalorder %s2548_s2, %s2548_s2 }
  0x34   :  { %479 = vmatprep.subr.bf16.mxu0 %v3121_v7  ;;  %3090 = vmatprep.subr.bf16.mxu1 %v3121_v7  ;;  %v3154_v32 = vld [vmem:[#allocation5 + $0xcc] ss:$24 sps:$4 sm:$0xff]   ;;  %v3152_v35 = vld [vmem:[#allocation5 + $0xc8] ss:$24 sps:$4 sm:$0xff]   ;;  %v3758_v37 = vld [vmem:[#allocation2 + $0x70] sm:$0xff]   ;;  %p3669_p1 = scmp.ne.s32.totalorder %s2548_s2, %s3668_s30  ;;  %p3674_p3 = scmp.lt.s32.totalorder %s3668_s30, %s3668_s30 }
  0x35   :  { %v3180_v34 = vld [vmem:[#allocation5 + $0xd4] ss:$24 sps:$4 sm:$0xff]   ;;  %v3178_v39 = vld [vmem:[#allocation5 + $0xd0] ss:$24 sps:$4 sm:$0xff]   ;;  %v3183_v43 = vld [vmem:[#allocation5 + $0xa0] ss:$24 sps:$4 sm:$0xff]  }
  0x36   :  { %v3160_v40 = vld [vmem:[#allocation5 + $0x98] ss:$24 sps:$4 sm:$0xff]   ;;  %v3165_v41 = vld [vmem:[#allocation5 + $0x6c] ss:$24 sps:$4 sm:$0xff]   ;;  %v3163_v44 = vld [vmem:[#allocation5 + $0x68] ss:$24 sps:$4 sm:$0xff]   ;;  %p3675_p4 = por %p3674_p3, %p3673_p2 }
  0x37   :  { %480 = vmatpush1.bf16.msra.mxu0 %v3123_v8  ;;  %3098 = vmatpush1.bf16.msra.mxu1 %v3123_v8  ;;  %v3189_v45 = vld [vmem:[#allocation5 + $0x74] ss:$24 sps:$4 sm:$0xff]   ;;  %v3764_v47 = vld [vmem:[#allocation2 + $0x18] sm:$0xff]   ;;  %v3187_v51 = vld [vmem:[#allocation5 + $0x70] ss:$24 sps:$4 sm:$0xff]  }
  0x38   :  { %481 = vmatprep.subr.bf16.mxu0 %v3124_v9  ;;  %3091 = vmatprep.subr.bf16.mxu1 %v3124_v9  ;;  %v3170_v46 = vld [vmem:[#allocation5 + $0x3c] ss:$24 sps:$4 sm:$0xff]   ;;  %v3168_v49 = vld [vmem:[#allocation5 + $0x38] ss:$24 sps:$4 sm:$0xff]   ;;  %v3176_v50 = vld [vmem:[#allocation5 + $0xc] ss:$24 sps:$4 sm:$0xff]   ;;  %p3676_p5 = pnand %p3675_p4, %p3669_p1 }
  0x39   :  { %v3766_v48 = vld [vmem:[#allocation2 + $0x78] sm:$0xff]   ;;  %v3174_v53 = vld [vmem:[#allocation5 + $0x8] ss:$24 sps:$4 sm:$0xff]   ;;  %v3198_v56 = vld [vmem:[#allocation5 + $0x14] ss:$24 sps:$4 sm:$0xff]  }
  0x3a   :  { %v3194_v52 = vld [vmem:[#allocation5 + $0x44] ss:$24 sps:$4 sm:$0xff]   ;;  %v3192_v54 = vld [vmem:[#allocation5 + $0x40] ss:$24 sps:$4 sm:$0xff]   ;;  %v3196_v57 = vld [vmem:[#allocation5 + $0x10] ss:$24 sps:$4 sm:$0xff]  }
  0x3b   :  { %482 = vmatpush1.bf16.msra.mxu0 %v3126_v10  ;;  %3099 = vmatpush1.bf16.msra.mxu1 %v3126_v10  ;;  %v3772_v55 = vld [vmem:[#allocation2 + $0x20] sm:$0xff]   ;;  %v3778_v58 = vld [vmem:[#allocation2 + $0x28] sm:$0xff]   ;;  %v3200_v59 = vld [vmem:[#allocation7 + $0x78] sm:$0xff]  }
  0x3c   :  { %483 = vmatprep.subr.bf16.mxu0 %v3127_v11  ;;  %3092 = vmatprep.subr.bf16.mxu1 %v3127_v11  ;;  %v3201_v60 = vld [vmem:[#allocation7 + $0x38] sm:$0xff]   ;;  %v3784_v61 = vld [vmem:[#allocation2 + $0x30] sm:$0xff]   ;;  %v3190_v2 = vld [vmem:[#allocation2 + $0x40] sm:$0xff]  }
  0x3d   :  { %v3790_v62 = vld [vmem:[#allocation2 + $0x38] sm:$0xff]   ;;  %v3202_v63 = vld [vmem:[#allocation7 + $0x70] sm:$0xff]   ;;  %v3191_v3 = vld [vmem:[#allocation2 + $0x48] sm:$0xff]  }
  0x3e   :  { %v3203_v1 = vld [vmem:[#allocation7 + $0x30] sm:$0xff]   ;;  %v3199_v5 = vld [vmem:[#allocation2 + $0x58] sm:$0xff]   ;;  %v3204_v6 = vld [vmem:[#allocation7 + $0x68] sm:$0xff]  }
  0x3f   :  { %484 = vmatpush1.bf16.msra.mxu0 %v3129_v12  ;;  %3100 = vmatpush1.bf16.msra.mxu1 %v3129_v12  ;;  %v3195_v4 = vld [vmem:[#allocation2 + $0x50] sm:$0xff]   ;;  %v3205_v7 = vld [vmem:[#allocation7 + $0x28] sm:$0xff]   ;;  %v3206_v8 = vld [vmem:[#allocation7 + $0x60] sm:$0xff]  }
  0x40   :  { %485 = vmatprep.subr.bf16.mxu0 %v3130_v13  ;;  %3093 = vmatprep.subr.bf16.mxu1 %v3130_v13  ;;  %v3207_v9 = vld [vmem:[#allocation7 + $0x20] sm:$0xff]   ;;  %v3208_v10 = vld [vmem:[#allocation7 + $0x58] sm:$0xff]  }
  0x41   :  { %v3209_v11 = vld [vmem:[#allocation7 + $0x18] sm:$0xff]  }
  0x42   :  { %v3210_v12 = vld [vmem:[#allocation7 + $0xb8] sm:$0xff]  }
  0x43   :  { %486 = vmatpush1.bf16.msra.mxu0 %v3132_v14  ;;  %3101 = vmatpush1.bf16.msra.mxu1 %v3132_v14 }
  0x44   :  { %487 = vmatprep.subr.bf16.mxu0 %v3133_v15  ;;  %3094 = vmatprep.subr.bf16.mxu1 %v3133_v15 }
  0x47   :  { %488 = vmatpush1.bf16.msra.mxu0 %v3135_v16  ;;  %3102 = vmatpush1.bf16.msra.mxu1 %v3135_v16 }
  0x48   :  { %666 = vmatprep.subr.bf16.mxu1 %v3140_v17  ;;  %859 = vmatprep.subr.bf16.mxu0 %v3143_v18  ;;  %v3213_v17 = vld [vmem:[#allocation7 + $0xb0] sm:$0xff]  }
  0x4a   :  { %506 = vmatmul.mubr.bf16.vlgmr.msra.gmra.mxu0 %v3740_v19  ;;  %626 = vmatmul.mubr.bf16.vlgmr.msra.gmra.mxu1 %v3742_v20 }
  0x4b   :  { %667 = vmatpush1.bf16.msra.mxu1 %v3138_v21  ;;  %860 = vmatpush1.bf16.msra.mxu0 %v3141_v22 }
  0x4c   :  { %668 = vmatprep.subr.bf16.mxu1 %v3146_v23  ;;  %515 = vmatprep.mubr.bf16.mxu0 %v3701_v0 }
  0x4d   :  { %635 = vmatprep.mubr.bf16.mxu1 %v3701_v0  ;;  %861 = vmatprep.subr.bf16.mxu0 %v3157_v24 }
  0x4f   :  { %669 = vmatpush1.bf16.msra.mxu1 %v3144_v25  ;;  %862 = vmatpush1.bf16.msra.mxu0 %v3155_v27  ;;  %v3212_v27 = vld [vmem:[#allocation7 + $0x10] sm:$0xff]  }
  0x50   :  { %670 = vmatprep.subr.bf16.mxu1 %v3151_v26  ;;  %863 = vmatprep.subr.bf16.mxu0 %v3173_v28  ;;  %v3211_v26 = vld [vmem:[#allocation7 + $0x50] sm:$0xff]  }
  0x52   :  { %516 = vmatmul.mubr.bf16.gmra.mxu0 %v3748_v29  ;;  %636 = vmatmul.mubr.bf16.gmra.mxu1 %v3750_v30 }
  0x53   :  { %671 = vmatpush1.bf16.msra.mxu1 %v3149_v31  ;;  %525 = vmatprep.mubr.bf16.mxu0 %v3701_v0 }
  0x54   :  { %672 = vmatprep.subr.bf16.mxu1 %v3154_v32  ;;  %645 = vmatprep.mubr.bf16.mxu1 %v3701_v0 }
  0x55   :  { %864 = vmatpush1.bf16.msra.mxu0 %v3171_v33 }
  0x56   :  { %865 = vmatprep.subr.bf16.mxu0 %v3180_v34 }
  0x57   :  { %673 = vmatpush1.bf16.msra.mxu1 %v3152_v35 }
  0x58   :  { %674 = vmatprep.subr.bf16.mxu1 %v3162_v38 }
  0x59   :  { %866 = vmatpush1.bf16.msra.mxu0 %v3178_v39 }
  0x5a   :  { %526 = vmatmul.mubr.bf16.gmra.mxu0 %v3756_v36  ;;  %646 = vmatmul.mubr.bf16.gmra.mxu1 %v3758_v37 }
  0x5b   :  { %675 = vmatpush1.bf16.msra.mxu1 %v3160_v40  ;;  %535 = vmatprep.mubr.bf16.mxu0 %v3701_v0 }
  0x5c   :  { %676 = vmatprep.subr.bf16.mxu1 %v3165_v41  ;;  %655 = vmatprep.mubr.bf16.mxu1 %v3701_v0 }
  0x5d   :  { %867 = vmatprep.subr.bf16.mxu0 %v3185_v42 }
  0x5e   :  { %868 = vmatpush1.bf16.msra.mxu0 %v3183_v43 }
  0x5f   :  { %677 = vmatpush1.bf16.msra.mxu1 %v3163_v44  ;;  %869 = vmatprep.subr.bf16.mxu0 %v3189_v45 }
  0x60   :  { %678 = vmatprep.subr.bf16.mxu1 %v3170_v46  ;;  %v3216_v46 = vld [vmem:[#allocation7 + $0xa8] sm:$0xff]  }
  0x62   :  { %536 = vmatmul.mubr.bf16.gmra.mxu0 %v3764_v47  ;;  %656 = vmatmul.mubr.bf16.gmra.mxu1 %v3766_v48 }
  0x63   :  { %679 = vmatpush1.bf16.msra.mxu1 %v3168_v49  ;;  %545 = vmatprep.mubr.bf16.mxu0 %v3701_v0 }
  0x64   :  { %680 = vmatprep.subr.bf16.mxu1 %v3176_v50  ;;  %698 = vmatprep.mubr.bf16.mxu1 %v3701_v0 }
  0x65   :  { %870 = vmatpush1.bf16.msra.mxu0 %v3187_v51 }
  0x66   :  { %871 = vmatprep.subr.bf16.mxu0 %v3194_v52 }
  0x67   :  { %681 = vmatpush1.bf16.msra.mxu1 %v3174_v53 }
  0x68   :  { %2903 = vmatprep.subr.bf16.mxu1 %v3200_v59 }
  0x69   :  { %872 = vmatpush1.bf16.msra.mxu0 %v3192_v54 }
  0x6a   :  { %546 = vmatmul.mubr.bf16.gmra.mxu0 %v3772_v55  ;;  %699 = vmatmul.mubr.bf16.vlgmr.msra.gmra.mxu1 %v3740_v19 }
  0x6b   :  { %555 = vmatprep.mubr.bf16.mxu0 %v3701_v0  ;;  %708 = vmatprep.mubr.bf16.mxu1 %v3701_v0 }
  0x6c   :  { %873 = vmatprep.subr.bf16.mxu0 %v3198_v56  ;;  %2904 = vmatpush3.bf16.msra.mxu1 %v3201_v60 }
  0x6d   :  { %874 = vmatpush1.bf16.msra.mxu0 %v3196_v57  ;;  %2905 = vmatprep.subr.bf16.mxu1 %v3202_v63 }
  0x6e   :  { %3039 = vmatprep.subr.bf16.mxu0 %v3210_v12 }
  0x70   :  { %2906 = vmatpush3.bf16.msra.mxu1 %v3203_v1 }
  0x71   :  { %2907 = vmatprep.subr.bf16.mxu1 %v3204_v6 }
  0x72   :  { %556 = vmatmul.mubr.bf16.gmra.mxu0 %v3778_v58  ;;  %709 = vmatmul.mubr.bf16.gmra.mxu1 %v3748_v29 }
  0x73   :  { %565 = vmatprep.mubr.bf16.mxu0 %v3701_v0  ;;  %718 = vmatprep.mubr.bf16.mxu1 %v3701_v0 }
  0x74   :  { %2908 = vmatpush3.bf16.msra.mxu1 %v3205_v7  ;;  %v3215_v7 = vld [vmem:[#allocation7 + $0x8] sm:$0xff]  }
  0x75   :  { %2909 = vmatprep.subr.bf16.mxu1 %v3206_v8 }
  0x78   :  { %2910 = vmatpush3.bf16.msra.mxu1 %v3207_v9 }
  0x79   :  { %2911 = vmatprep.subr.bf16.mxu1 %v3208_v10 }
  0x7a   :  { %566 = vmatmul.mubr.bf16.gmra.mxu0 %v3784_v61  ;;  %719 = vmatmul.mubr.bf16.gmra.mxu1 %v3756_v36 }
  0x7b   :  { %575 = vmatprep.mubr.bf16.mxu0 %v3701_v0  ;;  %728 = vmatprep.mubr.bf16.mxu1 %v3701_v0 }
  0x7c   :  { %2912 = vmatpush3.bf16.msra.mxu1 %v3209_v11 }
  0x7d   :  { %2913 = vmatprep.subr.bf16.mxu1 %v3211_v26 }
  0x80   :  { %2914 = vmatpush3.bf16.msra.mxu1 %v3212_v27  ;;  %v3218_v27 = vld [vmem:[#allocation7] sm:$0xff]  }
  0x82   :  { %576 = vmatmul.mubr.bf16.gmra.mxu0 %v3790_v62  ;;  %729 = vmatmul.mubr.bf16.gmra.mxu1 %v3764_v47 }
  0x83   :  { %585 = vmatprep.mubr.bf16.mxu0 %v3701_v0  ;;  %738 = vmatprep.mubr.bf16.mxu1 %v3701_v0 }
  0x8a   :  { %586 = vmatmul.mubr.bf16.gmra.mxu0 %v3190_v2  ;;  %739 = vmatmul.mubr.bf16.gmra.mxu1 %v3772_v55 }
  0x8b   :  { %595 = vmatprep.mubr.bf16.mxu0 %v3701_v0  ;;  %748 = vmatprep.mubr.bf16.mxu1 %v3701_v0 }
  0x92   :  { %596 = vmatmul.mubr.bf16.gmra.mxu0 %v3191_v3  ;;  %749 = vmatmul.mubr.bf16.gmra.mxu1 %v3778_v58 }
  0x93   :  { %605 = vmatprep.mubr.bf16.mxu0 %v3701_v0  ;;  %758 = vmatprep.mubr.bf16.mxu1 %v3701_v0 }
  0x9a   :  { %606 = vmatmul.mubr.bf16.gmra.mxu0 %v3195_v4  ;;  %759 = vmatmul.mubr.bf16.gmra.mxu1 %v3784_v61 }
  0x9b   :  { %615 = vmatprep.mubr.bf16.mxu0 %v3701_v0  ;;  %768 = vmatprep.mubr.bf16.mxu1 %v3701_v0 }
  0xa2   :  { %616 = vmatmul.mubr.bf16.gmra.mxu0 %v3199_v5  ;;  %769 = vmatmul.mubr.bf16.gmra.mxu1 %v3790_v62 }
  0xa3   :  { %778 = vmatprep.mubr.bf16.mxu1 %v3701_v0  ;;  %891 = vmatprep.mubr.bf16.mxu0 %v3701_v0 }
  0xaa   :  { %779 = vmatmul.mubr.bf16.gmra.mxu1 %v3190_v2  ;;  %892 = vmatmul.mubr.bf16.vlgmr.msra.gmra.mxu0 %v3740_v19 }
  0xab   :  { %788 = vmatprep.mubr.bf16.mxu1 %v3701_v0  ;;  %901 = vmatprep.mubr.bf16.mxu0 %v3701_v0 }
  0xac   :  { %3040 = vmatpush3.bf16.msra.mxu0 %v3210_v12 }
  0xad   :  { %3041 = vmatprep.subr.bf16.mxu0 %v3213_v17 }
  0xb0   :  { %3042 = vmatpush3.bf16.msra.mxu0 %v3213_v17 }
  0xb1   :  { %3043 = vmatprep.subr.bf16.mxu0 %v3216_v46 }
  0xb2   :  { %789 = vmatmul.mubr.bf16.gmra.mxu1 %v3191_v3  ;;  %902 = vmatmul.mubr.bf16.gmra.mxu0 %v3748_v29 }
  0xb3   :  { %798 = vmatprep.mubr.bf16.mxu1 %v3701_v0  ;;  %911 = vmatprep.mubr.bf16.mxu0 %v3701_v0 }
  0xb4   :  { %3044 = vmatpush3.bf16.msra.mxu0 %v3216_v46 }
  0xba   :  { %799 = vmatmul.mubr.bf16.gmra.mxu1 %v3195_v4  ;;  %912 = vmatmul.mubr.bf16.gmra.mxu0 %v3756_v36 }
  0xbb   :  { %808 = vmatprep.mubr.bf16.mxu1 %v3701_v0  ;;  %921 = vmatprep.mubr.bf16.mxu0 %v3701_v0 }
  0xc2   :  { %809 = vmatmul.mubr.bf16.gmra.mxu1 %v3199_v5  ;;  %922 = vmatmul.mubr.bf16.gmra.mxu0 %v3764_v47 }
  0xc3   :  { %818 = vmatprep.mubr.bf16.mxu1 %v3701_v0  ;;  %931 = vmatprep.mubr.bf16.mxu0 %v3701_v0 }
  0xca   :  { %819 = vmatmul.mubr.bf16.gmra.mxu1 %v3742_v20  ;;  %932 = vmatmul.mubr.bf16.gmra.mxu0 %v3772_v55 }
  0xcb   :  { %828 = vmatprep.mubr.bf16.mxu1 %v3701_v0  ;;  %941 = vmatprep.mubr.bf16.mxu0 %v3701_v0 }
  0xd2   :  { %829 = vmatmul.mubr.bf16.gmra.mxu1 %v3750_v30  ;;  %942 = vmatmul.mubr.bf16.gmra.mxu0 %v3778_v58  ;;  %v3219_v58 = vld [vmem:[#allocation7 + $0xa0] sm:$0xff]  }
  0xd3   :  { %838 = vmatprep.mubr.bf16.mxu1 %v3701_v0  ;;  %951 = vmatprep.mubr.bf16.mxu0 %v3701_v0 }
  0xd4   :  { %3045 = vmatprep.subr.bf16.mxu0 %v3219_v58 }
  0xd5   :  { %3046 = vmatpush3.bf16.msra.mxu0 %v3219_v58  ;;  %v3220_v58 = vld [vmem:[#allocation7 + $0x98] sm:$0xff]  }
  0xd6   :  { %3047 = vmatprep.subr.bf16.mxu0 %v3220_v58 }
  0xd9   :  { %3048 = vmatpush3.bf16.msra.mxu0 %v3220_v58 }
  0xda   :  { %839 = vmatmul.mubr.bf16.gmra.mxu1 %v3758_v37  ;;  %952 = vmatmul.mubr.bf16.gmra.mxu0 %v3784_v61 }
  0xdb   :  { %848 = vmatprep.mubr.bf16.mxu1 %v3701_v0  ;;  %961 = vmatprep.mubr.bf16.mxu0 %v3701_v0 }
  0xe2   :  { %849 = vmatmul.mubr.bf16.gmra.mxu1 %v3766_v48  ;;  %962 = vmatmul.mubr.bf16.gmra.mxu0 %v3790_v62 }
  0xe3   :  { %971 = vmatprep.mubr.bf16.mxu0 %v3701_v0 }
  0xea   :  { %972 = vmatmul.mubr.bf16.gmra.mxu0 %v3190_v2 }
  0xeb   :  { %981 = vmatprep.mubr.bf16.mxu0 %v3701_v0 }
  0xf2   :  { %982 = vmatmul.mubr.bf16.gmra.mxu0 %v3191_v3 }
  0xf3   :  { %991 = vmatprep.mubr.bf16.mxu0 %v3701_v0 }
  0xfa   :  { %992 = vmatmul.mubr.bf16.gmra.mxu0 %v3195_v4 }
  0xfb   :  { %1001 = vmatprep.mubr.bf16.mxu0 %v3701_v0 }
 0x102   :  { %1002 = vmatmul.mubr.bf16.gmra.mxu0 %v3199_v5  ;;  %v3214_v5 = vld [vmem:[#allocation7 + $0x48] sm:$0xff]  }
 0x103   :  { %1011 = vmatprep.mubr.bf16.mxu0 %v3701_v0  ;;  %2915 = vmatprep.subr.bf16.mxu1 %v3214_v5 }
 0x104   :  { %2916 = vmatpush3.bf16.msra.mxu1 %v3215_v7 }
 0x10a   :  { %v3839_v13 = vpop.f32.mrf.mxu0  ;;  %v3841_v14 = vpop.f32.mrf.mxu1  ;;  %1012 = vmatmul.mubr.bf16.gmra.mxu0 %v3742_v20 }
 0x10b   :  { %4659 = vst [vmem:[#allocation12_spill] sm:$0xff] %v3841_v14  ;;  %v2624_v15 = vmul.f32 -1.442695, %v3839_v13  ;;  %v2696_v16 = vmul.f32 -1.442695, %v3841_v14  ;;  %1021 = vmatprep.mubr.bf16.mxu0 %v3701_v0 }
 0x10c   :  { %v3847_v18 = vpop.f32.mrf.mxu0  ;;  %v3849_v19 = vpop.f32.mrf.mxu1 }
 0x10d   :  { %4660 = vst [vmem:[#allocation13_spill] sm:$0xff] %v3849_v19  ;;  %3224 = vpow2.f32 %v2624_v15  ;;  %v2625_v21 = vmul.f32 -1.442695, %v3847_v18  ;;  %v2697_v22 = vmul.f32 -1.442695, %v3849_v19 }
 0x10e   :  { %v3853_v23 = vpop.f32.mrf.mxu0  ;;  %v3855_v20 = vpop.f32.mrf.mxu1  ;;  %3226 = vpow2.f32 %v2696_v16 }
 0x10f   :  { %4661 = vst [vmem:[#allocation14_spill] sm:$0xff] %v3855_v20  ;;  %v2627_v24 = vmul.f32 -1.442695, %v3853_v23  ;;  %v2699_v25 = vmul.f32 -1.442695, %v3855_v20  ;;  %3228 = vpow2.f32 %v2625_v21 }
 0x110   :  { %v3859_v28 = vpop.f32.mrf.mxu0  ;;  %v3861_v29 = vpop.f32.mrf.mxu1 }
 0x111   :  { %4662 = vst [vmem:[#allocation15_spill] sm:$0xff] %v3861_v29  ;;  %3230 = vpow2.f32 %v2627_v24  ;;  %v2628_v31 = vmul.f32 -1.442695, %v3859_v28  ;;  %v2700_v32 = vmul.f32 -1.442695, %v3861_v29 }
 0x112   :  { %3232 = vpow2.f32 %v2697_v22  ;;  %v3865_v33 = vpop.f32.mrf.mxu0  ;;  %v3867_v34 = vpop.f32.mrf.mxu1  ;;  %1022 = vmatmul.mubr.bf16.gmra.mxu0 %v3750_v30 }
 0x113   :  { %4663 = vst [vmem:[#allocation16_spill] sm:$0xff] %v3867_v34  ;;  %3234 = vpow2.f32 %v2699_v25  ;;  %v2630_v35 = vmul.f32 -1.442695, %v3865_v33  ;;  %v2702_v36 = vmul.f32 -1.442695, %v3867_v34  ;;  %1031 = vmatprep.mubr.bf16.mxu0 %v3701_v0  ;;  %v3217_v25 = vld [vmem:[#allocation7 + $0x40] sm:$0xff]  }
 0x114   :  { %3236 = vpow2.f32 %v2628_v31  ;;  %v3873_v38 = vpop.f32.mrf.mxu0  ;;  %v3875_v39 = vpop.f32.mrf.mxu1  ;;  %2917 = vmatprep.subr.bf16.mxu1 %v3217_v25 }
 0x115   :  { %4664 = vst [vmem:[#allocation17_spill] sm:$0xff] %v3875_v39  ;;  %3238 = vpow2.f32 %v2630_v35  ;;  %v2631_v40 = vmul.f32 -1.442695, %v3873_v38  ;;  %v2703_v41 = vmul.f32 -1.442695, %v3875_v39  ;;  %2918 = vmatpush3.bf16.msra.mxu1 %v3218_v27 }
 0x116   :  { %3240 = vpow2.f32 %v2700_v32  ;;  %v3879_v30 = vpop.f32.mrf.mxu0  ;;  %v3881_v42 = vpop.f32.mrf.mxu1 }
 0x117   :  { %4665 = vst [vmem:[#allocation18_spill] sm:$0xff] %v3881_v42  ;;  %3242 = vpow2.f32 %v2702_v36  ;;  %v2633_v43 = vmul.f32 -1.442695, %v3879_v30  ;;  %v2705_v52 = vmul.f32 -1.442695, %v3881_v42 }
 0x118   :  { %3244 = vpow2.f32 %v2631_v40  ;;  %v3884_v44 = vpop.f32.mrf.mxu0  ;;  %v3886_v45 = vpop.f32.mrf.mxu1 }
 0x119   :  { %4666 = vst [vmem:[#allocation19_spill] sm:$0xff] %v3886_v45  ;;  %3246 = vpow2.f32 %v2633_v43  ;;  %v2634_v54 = vmul.f32 -1.442695, %v3884_v44 }
 0x11a   :  { %v3225_v47 = vpop.eup %3224  ;;  %3248 = vpow2.f32 %v2703_v41  ;;  %v3888_v49 = vpop.f32.mrf.mxu0  ;;  %1032 = vmatmul.mubr.bf16.gmra.mxu0 %v3758_v37  ;;  %v2706_v37 = vmul.f32 -1.442695, %v3886_v45 }
 0x11b   :  { %v3890_v50 = vpop.f32.mrf.mxu1  ;;  %v1340_v51 = vadd.f32 1.0, %v3225_v47  ;;  %1041 = vmatprep.mubr.bf16.mxu0 %v3701_v0  ;;  %v3227_v53 = vpop.eup %3226 }
 0x11c   :  { %4667 = vst [vmem:[#allocation20_spill] sm:$0xff] %v3890_v50  ;;  %v3896_v55 = vpop.f32.mrf.mxu0  ;;  %v3229_v57 = vpop.eup %3228  ;;  %v1412_v62 = vadd.f32 1.0, %v3227_v53 }
 0x11d   :  { %v3898_v56 = vpop.f32.mrf.mxu1  ;;  %3250 = vrcp.f32 %v1340_v51  ;;  %v1341_v2 = vadd.f32 1.0, %v3229_v57  ;;  %v2636_v51 = vmul.f32 -1.442695, %v3888_v49 }
 0x11e   :  { %4668 = vst [vmem:[#allocation21_spill] sm:$0xff] %v3898_v56  ;;  %v3231_v59 = vpop.eup %3230  ;;  %v3901_v60 = vpop.f32.mrf.mxu0  ;;  %3252 = vpow2.f32 %v2705_v52 }
 0x11f   :  { %v3903_v61 = vpop.f32.mrf.mxu1  ;;  %v3233_v0 = vpop.eup %3232  ;;  %v1343_v63 = vadd.f32 1.0, %v3231_v59  ;;  %3254 = vpow2.f32 %v2634_v54  ;;  %v2708_v59 = vmul.f32 -1.442695, %v3890_v50  ;;  %v2639_v5 = vmul.f32 -1.442695, %v3901_v60 }
 0x120   :  { %4669 = vst [vmem:[#allocation22_spill] sm:$0xff] %v3903_v61  ;;  %v3235_v1 = vpop.eup %3234  ;;  %v3905_v3 = vpop.f32.mrf.mxu0  ;;  %v1413_v9 = vadd.f32 1.0, %v3233_v0  ;;  %v2637_v0 = vmul.f32 -1.442695, %v3896_v55  ;;  %v2711_v7 = vmul.f32 -1.442695, %v3903_v61 }
 0x121   :  { %4670 = vst [vmem:[#allocation23_spill] sm:$0xff] %v3905_v3  ;;  %v3907_v4 = vpop.f32.mrf.mxu1  ;;  %v3237_v6 = vpop.eup %3236  ;;  %3256 = vrcp.f32 %v1343_v63  ;;  %v1415_v15 = vadd.f32 1.0, %v3235_v1 }
 0x122   :  { %4671 = vst [vmem:[#allocation24_spill] sm:$0xff] %v3907_v4  ;;  %v3239_v8 = vpop.eup %3238  ;;  %3258 = vpow2.f32 %v2706_v37  ;;  %v3909_v10 = vpop.f32.mrf.mxu0  ;;  %1042 = vmatmul.mubr.bf16.gmra.mxu0 %v3766_v48  ;;  %v1344_v21 = vadd.f32 1.0, %v3237_v6  ;;  %v2712_v29 = vmul.f32 -1.442695, %v3907_v4 }
 0x123   :  { %v3911_v11 = vpop.f32.mrf.mxu1  ;;  %v3241_v12 = vpop.eup %3240  ;;  %3260 = vrcp.f32 %v1412_v62  ;;  %v1346_v16 = vadd.f32 1.0, %v3239_v8 }
 0x124   :  { %4672 = vst [vmem:[#allocation25_spill] sm:$0xff] %v3911_v11  ;;  %v3243_v17 = vpop.eup %3242  ;;  %3262 = vrcp.f32 %v1341_v2  ;;  %v3914_v22 = vpop.f32.mrf.mxu0  ;;  %v1416_v48 = vadd.f32 1.0, %v3241_v12  ;;  %v3221_v12 = vld [vmem:[#allocation7 + $0x90] sm:$0xff]  }
 0x125   :  { %4673 = vst [vmem:[#allocation26_spill] sm:$0xff] %v3914_v22  ;;  %v3916_v24 = vpop.f32.mrf.mxu1  ;;  %v3245_v26 = vpop.eup %3244  ;;  %3264 = vrcp.f32 %v1346_v16  ;;  %v1418_v40 = vadd.f32 1.0, %v3243_v17  ;;  %v2640_v17 = vmul.f32 -1.442695, %v3905_v3  ;;  %3049 = vmatprep.subr.bf16.mxu0 %v3221_v12 }
 0x126   :  { %4674 = vst [vmem:[#allocation27_spill] sm:$0xff] %v3916_v24  ;;  %v3247_v31 = vpop.eup %3246  ;;  %3266 = vrcp.f32 %v1413_v9  ;;  %v3918_v32 = vpop.f32.mrf.mxu0  ;;  %v1347_v43 = vadd.f32 1.0, %v3245_v26  ;;  %3050 = vmatpush3.bf16.msra.mxu0 %v3221_v12 }
 0x127   :  { %v3920_v35 = vpop.f32.mrf.mxu1  ;;  %v3249_v36 = vpop.eup %3248  ;;  %3268 = vrcp.f32 %v1415_v15  ;;  %v1349_v41 = vadd.f32 1.0, %v3247_v31  ;;  %v2642_v31 = vmul.f32 -1.442695, %v3909_v10 }
 0x128   :  { %4675 = vst [vmem:[#allocation28_spill] sm:$0xff] %v3920_v35  ;;  %3270 = vrcp.f32 %v1344_v21  ;;  %v3922_v46 = vpop.f32.mrf.mxu0  ;;  %v1419_v53 = vadd.f32 1.0, %v3249_v36  ;;  %v2717_v12 = vmul.f32 -1.442695, %v3920_v35 }
 0x129   :  { %4676 = vst [vmem:[#allocation29_spill] sm:$0xff] %v3922_v46  ;;  %v3924_v47 = vpop.f32.mrf.mxu1  ;;  %3272 = vrcp.f32 %v1349_v41 }
 0x12a   :  { %4677 = vst [vmem:[#allocation30_spill] sm:$0xff] %v3924_v47  ;;  %v3251_v52 = vpop.eup %3250  ;;  %3274 = vrcp.f32 %v1416_v48  ;;  %v3927_v54 = vpop.f32.mrf.mxu0 }
 0x12b   :  { %v3929_v57 = vpop.f32.mrf.mxu1  ;;  %3276 = vrcp.f32 %v1418_v40  ;;  %v3253_v37 = vpop.eup %3252  ;;  %v1628_v2 = vmul.f32 %v3251_v52, %v3839_v13  ;;  %v2714_v40 = vmul.f32 -1.442695, %v3911_v11 }
 0x12c   :  { %3278 = vrcp.f32 %v1347_v43  ;;  %v3933_v62 = vpop.f32.mrf.mxu0  ;;  %v3255_v1 = vpop.eup %3254  ;;  %v1421_v21 = vadd.f32 1.0, %v3253_v37 }
 0x12d   :  { %4678 = vst [vmem:[#allocation31_spill] sm:$0xff] %v3933_v62  ;;  %v702_v63 = vpop.f32.mrf.mxu1  ;;  %3280 = vpow2.f32 %v2636_v51  ;;  %v3222_v51 = vld [vmem:[#allocation7 + $0x88] sm:$0xff]   ;;  %v1350_v37 = vadd.f32 1.0, %v3255_v1  ;;  %v3223_v1 = vld [vmem:[#allocation7 + $0x80] sm:$0xff]  }
 0x12e   :  { %v3257_v6 = vpop.eup %3256  ;;  %3282 = vrcp.f32 %v1419_v53  ;;  %v3938_v8 = vpop.f32.mrf.mxu0  ;;  %v3951_v48 = vmul.f32 %v1628_v2, %v702_v63  ;;  %v2643_v53 = vmul.f32 -1.442695, %v3914_v22  ;;  %3051 = vmatprep.subr.bf16.mxu0 %v3222_v51 }
 0x12f   :  { %v3940_v9 = vpop.f32.mrf.mxu1  ;;  %v3259_v15 = vpop.eup %3258  ;;  %v1631_v16 = vmul.f32 %v3257_v6, %v3853_v23  ;;  %3284 = vpow2.f32 %v2708_v59  ;;  %v2645_v6 = vmul.f32 -1.442695, %v3918_v32  ;;  %3052 = vmatpush3.bf16.msra.mxu0 %v3222_v51 }
 0x130   :  { %v3944_v13 = vpop.eup %3260  ;;  %3286 = vpow2.f32 %v2637_v0  ;;  %v3946_v25 = vpop.f32.mrf.mxu0  ;;  %3053 = vmatprep.subr.bf16.mxu0 %v3223_v1  ;;  %v2629_v14 = vmul.f32 -1.442695, %v3940_v9 }
 0x131   :  { %4679 = vst [vmem:[#allocation32_spill] sm:$0xff] %v3944_v13  ;;  %4680 = vst [vmem:[#allocation33_spill] sm:$0xff] %v3946_v25  ;;  %v706_v26 = vpop.f32.mrf.mxu1  ;;  %v3948_v27 = vpop.eup %3262  ;;  %3288 = vpow2.f32 %v2639_v5 }
 0x132   :  { %v3953_v36 = vmul.f32 %v1631_v16, %v706_v26  ;;  %v3265_v23 = vpop.eup %3264  ;;  %3290 = vpow2.f32 %v2711_v7  ;;  %v3956_v41 = vpop.f32.mrf.mxu0 }
 0x133   :  { %v3958_v43 = vpop.f32.mrf.mxu1  ;;  %v3960_v52 = vpop.eup %3266  ;;  %3292 = vpow2.f32 %v2640_v17  ;;  %v1634_v5 = vmul.f32 %v3265_v23, %v3865_v33  ;;  %v2646_v33 = vmul.f32 -1.442695, %v3922_v46  ;;  %v1422_v23 = vadd.f32 1.0, %v3259_v15  ;;  %3054 = vmatpush3.bf16.msra.mxu0 %v3223_v1 }
 0x134   :  { %4681 = vst [vmem:[#allocation34_spill] sm:$0xff] %v3960_v52  ;;  %v3965_v59 = vpop.eup %3268  ;;  %3294 = vrcp.f32 %v1421_v21  ;;  %v3967_v0 = vpop.f32.mrf.mxu0 }
 0x135   :  { %4682 = vst [vmem:[#allocation35_spill] sm:$0xff] %v3965_v59  ;;  %4683 = vst [vmem:[#allocation36_spill] sm:$0xff] %v3967_v0  ;;  %v712_v63 = vpop.f32.mrf.mxu1  ;;  %v3969_v2 = vpop.eup %3270  ;;  %3296 = vpow2.f32 %v2642_v31  ;;  %v2626_v59 = vmul.f32 -1.442695, %v3929_v57 }
 0x136   :  { %v3273_v7 = vpop.eup %3272  ;;  %3298 = vpow2.f32 %v2714_v40  ;;  %v3974_v16 = vpop.f32.mrf.mxu0  ;;  %v3988_v45 = vmul.f32 %v1634_v5, %v712_v63 }
 0x137   :  { %v3976_v17 = vpop.f32.mrf.mxu1  ;;  %v3978_v21 = vpop.eup %3274  ;;  %v1637_v26 = vmul.f32 %v3273_v7, %v3879_v30  ;;  %3300 = vpow2.f32 %v2643_v53  ;;  %v2709_v53 = vmul.f32 -1.442695, %v3898_v56 }
 0x138   :  { %4684 = vst [vmem:[#allocation37_spill] sm:$0xff] %v3978_v21  ;;  %v3982_v31 = vpop.eup %3276  ;;  %3302 = vrcp.f32 %v1350_v37  ;;  %v3984_v51 = vpop.f32.mrf.mxu0 }
 0x139   :  { %4685 = vst [vmem:[#allocation38_spill] sm:$0xff] %v3982_v31  ;;  %4686 = vst [vmem:[#allocation39_spill] sm:$0xff] %v3984_v51  ;;  %v716_v40 = vpop.f32.mrf.mxu1  ;;  %v3986_v58 = vpop.eup %3278  ;;  %3304 = vpow2.f32 %v2645_v6  ;;  %v2715_v6 = vmul.f32 -1.442695, %v3916_v24 }
 0x13a   :  { %v3990_v39 = vmul.f32 %v1637_v26, %v716_v40  ;;  %v3281_v30 = vpop.eup %3280  ;;  %3306 = vpow2.f32 %v2717_v12  ;;  %v3993_v7 = vpop.f32.mrf.mxu0 }
 0x13b   :  { %v3995_v37 = vpop.f32.mrf.mxu1  ;;  %v3997_v15 = vpop.eup %3282  ;;  %v1352_v21 = vadd.f32 1.0, %v3281_v30  ;;  %3308 = vpow2.f32 %v2646_v33  ;;  %v2718_v30 = vmul.f32 -1.442695, %v3924_v47 }
 0x13c   :  { %4687 = vst [vmem:[#allocation40_spill] sm:$0xff] %v3995_v37  ;;  %4688 = vst [vmem:[#allocation41_spill] sm:$0xff] %v3997_v15  ;;  %v3285_v5 = vpop.eup %3284  ;;  %3310 = vrcp.f32 %v1422_v23  ;;  %v4003_v1 = vpop.f32.mrf.mxu0 }
 0x13d   :  { %4689 = vst [vmem:[#allocation42_spill] sm:$0xff] %v4003_v1  ;;  %v4005_v12 = vpop.f32.mrf.mxu1  ;;  %v3287_v26 = vpop.eup %3286  ;;  %3312 = vrcp.f32 %v1352_v21  ;;  %v1424_v63 = vadd.f32 1.0, %v3285_v5 }
 0x13e   :  { %v3289_v40 = vpop.eup %3288  ;;  %3314 = vpow2.f32 %v2709_v53  ;;  %v4008_v56 = vpop.f32.mrf.mxu0  ;;  %v1353_v24 = vadd.f32 1.0, %v3287_v26 }
 0x13f   :  { %v4010_v33 = vpop.f32.mrf.mxu1  ;;  %v3291_v4 = vpop.eup %3290  ;;  %v1355_v15 = vadd.f32 1.0, %v3289_v40  ;;  %3316 = vpow2.f32 %v2712_v29 }
 0x140   :  { %v3293_v23 = vpop.eup %3292  ;;  %3318 = vpow2.f32 %v2715_v6  ;;  %v4012_v52 = vpop.f32.mrf.mxu0  ;;  %v1427_v47 = vadd.f32 1.0, %v3291_v4 }
 0x141   :  { %4690 = vst [vmem:[#allocation43_spill] sm:$0xff] %v4012_v52  ;;  %v4014_v19 = vpop.f32.mrf.mxu1  ;;  %v4016_v21 = vpop.eup %3294  ;;  %3320 = vrcp.f32 %v1355_v15  ;;  %v1356_v29 = vadd.f32 1.0, %v3293_v23 }
 0x142   :  { %4691 = vst [vmem:[#allocation44_spill] sm:$0xff] %v4016_v21  ;;  %v3297_v53 = vpop.eup %3296  ;;  %3322 = vpow2.f32 %v2718_v30  ;;  %v4018_v35 = vpop.f32.mrf.mxu0 }
 0x143   :  { %4692 = vst [vmem:[#allocation45_spill] sm:$0xff] %v4018_v35  ;;  %v4020_v11 = vpop.f32.mrf.mxu1  ;;  %v3299_v5 = vpop.eup %3298  ;;  %3324 = vrcp.f32 %v1424_v63  ;;  %v1358_v40 = vadd.f32 1.0, %v3297_v53 }
 0x144   :  { %4693 = vst [vmem:[#allocation46_spill] sm:$0xff] %v4020_v11  ;;  %v3301_v26 = vpop.eup %3300  ;;  %3326 = vrcp.f32 %v1353_v24  ;;  %v1430_v6 = vadd.f32 1.0, %v3299_v5  ;;  %v4022_v61 = vpop.f32.mrf.mxu0 }
 0x145   :  { %4694 = vst [vmem:[#allocation47_spill] sm:$0xff] %v4022_v61  ;;  %v4024_v50 = vpop.f32.mrf.mxu1  ;;  %v4026_v21 = vpop.eup %3302  ;;  %3328 = vrcp.f32 %v1358_v40  ;;  %v1359_v15 = vadd.f32 1.0, %v3301_v26 }
 0x146   :  { %v3305_v4 = vpop.eup %3304  ;;  %3330 = vrcp.f32 %v1427_v47  ;;  %v4028_v30 = vpop.f32.mrf.mxu0  ;;  %v2648_v47 = vmul.f32 -1.442695, %v3927_v54 }
 0x147   :  { %4695 = vst [vmem:[#allocation48_spill] sm:$0xff] %v4028_v30  ;;  %v4030_v42 = vpop.f32.mrf.mxu1  ;;  %v3307_v63 = vpop.eup %3306  ;;  %3332 = vrcp.f32 %v1356_v29  ;;  %v1361_v23 = vadd.f32 1.0, %v3305_v4  ;;  %v2649_v4 = vmul.f32 -1.442695, %v3933_v62 }
 0x148   :  { %v3309_v53 = vpop.eup %3308  ;;  %3334 = vrcp.f32 %v1430_v6  ;;  %v1433_v24 = vadd.f32 1.0, %v3307_v63  ;;  %v4032_v5 = vpop.f32.mrf.mxu0 }
 0x149   :  { %v4034_v31 = vpop.f32.mrf.mxu1  ;;  %v4036_v34 = vpop.eup %3310  ;;  %3336 = vrcp.f32 %v1361_v23  ;;  %v1362_v40 = vadd.f32 1.0, %v3309_v53  ;;  %v2651_v23 = vmul.f32 -1.442695, %v3938_v8 }
 0x14a   :  { %4696 = vst [vmem:[#allocation49_spill] sm:$0xff] %v4036_v34  ;;  %v3313_v26 = vpop.eup %3312  ;;  %3338 = vrcp.f32 %v1359_v15  ;;  %v4040_v20 = vpop.f32.mrf.mxu0 }
 0x14b   :  { %v4042_v29 = vpop.f32.mrf.mxu1  ;;  %v4044_v6 = vpop.eup %3314  ;;  %3340 = vrcp.f32 %v1433_v24  ;;  %v1640_v13 = vmul.f32 %v3313_v26, %v3888_v49  ;;  %v2652_v24 = vmul.f32 -1.442695, %v3946_v25  ;;  %v2632_v49 = vmul.f32 -1.442695, %v3958_v43 }
 0x14c   :  { %4697 = vst [vmem:[#allocation50_spill] sm:$0xff] %v4044_v6  ;;  %v4047_v63 = vpop.eup %3316  ;;  %3342 = vrcp.f32 %v1362_v40  ;;  %v4050_v53 = vpop.f32.mrf.mxu0  ;;  %v2655_v25 = vmul.f32 -1.442695, %v3967_v0 }
 0x14d   :  { %4698 = vst [vmem:[#allocation51_spill] sm:$0xff] %v4047_v63  ;;  %v4052_v34 = vpop.f32.mrf.mxu1  ;;  %v4054_v15 = vpop.eup %3318  ;;  %3344 = vpow2.f32 %v2648_v47 }
 0x14e   :  { %4699 = vst [vmem:[#allocation52_spill] sm:$0xff] %v4054_v15  ;;  %v3321_v6 = vpop.eup %3320  ;;  %3346 = vpow2.f32 %v2626_v59  ;;  %v4059_v62 = vpop.f32.mrf.mxu0  ;;  %v2654_v15 = vmul.f32 -1.442695, %v3956_v41 }
 0x14f   :  { %v4061_v40 = vpop.f32.mrf.mxu1  ;;  %v4063_v63 = vpop.eup %3322  ;;  %v1643_v46 = vmul.f32 %v3321_v6, %v3901_v60  ;;  %3348 = vpow2.f32 %v2649_v4  ;;  %v2657_v4 = vmul.f32 -1.442695, %v3974_v16 }
 0x150   :  { %4700 = vst [vmem:[#allocation53_spill] sm:$0xff] %v4063_v63  ;;  %v4067_v22 = vpop.eup %3324  ;;  %3350 = vpow2.f32 %v2651_v23  ;;  %v4070_v47 = vpop.f32.mrf.mxu0  ;;  %v4078_v63 = vmul.f32 %v1640_v13, %v4005_v12  ;;  %v2638_v13 = vmul.f32 -1.442695, %v3995_v37 }
 0x151   :  { %4701 = vst [vmem:[#allocation54_spill] sm:$0xff] %v4067_v22  ;;  %v4072_v59 = vpop.f32.mrf.mxu1  ;;  %v4074_v26 = vpop.eup %3326  ;;  %3352 = vpow2.f32 %v2629_v14  ;;  %v4081_v60 = vmul.f32 %v1643_v46, %v4014_v19  ;;  %v2635_v14 = vmul.f32 -1.442695, %v3976_v17  ;;  %v2658_v19 = vmul.f32 -1.442695, %v3984_v51 }
 0x152   :  { %4702 = vst [vmem:[#allocation55_spill] sm:$0xff] %v4074_v26  ;;  %4703 = vst [vmem:[#allocation56_spill] sm:$0xff] %v4078_v63  ;;  %v3329_v6 = vpop.eup %3328  ;;  %3354 = vpow2.f32 %v2652_v24  ;;  %v4084_v23 = vpop.f32.mrf.mxu0 }
 0x153   :  { %4704 = vst [vmem:[#allocation57_spill] sm:$0xff] %v4081_v60  ;;  %4705 = vst [vmem:[#allocation58_spill] sm:$0xff] %v4084_v23  ;;  %v4086_v22 = vpop.f32.mrf.mxu1  ;;  %v4088_v3 = vpop.eup %3330  ;;  %3356 = vpow2.f32 %v2654_v15  ;;  %v1646_v26 = vmul.f32 %v3329_v6, %v3909_v10  ;;  %v2660_v15 = vmul.f32 -1.442695, %v3993_v7  ;;  %v2663_v10 = vmul.f32 -1.442695, %v4008_v56 }
 0x154   :  { %4706 = vst [vmem:[#allocation59_spill] sm:$0xff] %v4088_v3  ;;  %v4093_v12 = vpop.eup %3332  ;;  %3358 = vpow2.f32 %v2632_v49  ;;  %v4096_v46 = vpop.f32.mrf.mxu0 }
 0x155   :  { %4707 = vst [vmem:[#allocation60_spill] sm:$0xff] %v4096_v46  ;;  %v4098_v24 = vpop.f32.mrf.mxu1  ;;  %v4100_v0 = vpop.eup %3334  ;;  %3360 = vpow2.f32 %v2655_v25 }
 0x156   :  { %4708 = vst [vmem:[#allocation61_spill] sm:$0xff] %v4100_v0  ;;  %v3337_v3 = vpop.eup %3336  ;;  %3362 = vpow2.f32 %v2657_v4  ;;  %v4105_v63 = vpop.f32.mrf.mxu0  ;;  %v2661_v0 = vmul.f32 -1.442695, %v4003_v1 }
 0x157   :  { %4709 = vst [vmem:[#allocation62_spill] sm:$0xff] %v4105_v63  ;;  %v4107_v49 = vpop.f32.mrf.mxu1  ;;  %v4109_v51 = vpop.eup %3338  ;;  %v1649_v46 = vmul.f32 %v3337_v3, %v3918_v32  ;;  %3364 = vpow2.f32 %v2635_v14 }
 0x158   :  { %4710 = vst [vmem:[#allocation63_spill] sm:$0xff] %v4107_v49  ;;  %v4113_v60 = vpop.eup %3340  ;;  %3366 = vpow2.f32 %v2658_v19  ;;  %v4116_v25 = vpop.f32.mrf.mxu0  ;;  %v4123_v49 = vmul.f32 %v1646_v26, %v4024_v50 }
 0x159   :  { %4711 = vst [vmem:[#allocation64_spill] sm:$0xff] %v4113_v60  ;;  %4712 = vst [vmem:[#allocation65_spill] sm:$0xff] %v4116_v25  ;;  %v4118_v6 = vpop.f32.mrf.mxu1  ;;  %v4120_v4 = vpop.eup %3342  ;;  %3368 = vpow2.f32 %v2660_v15  ;;  %v4126_v3 = vmul.f32 %v1649_v46, %v4034_v31 }
 0x15a   :  { %4713 = vst [vmem:[#allocation66_spill] sm:$0xff] %v4123_v49  ;;  %v3345_v32 = vpop.eup %3344  ;;  %3370 = vpow2.f32 %v2638_v13  ;;  %v4128_v14 = vpop.f32.mrf.mxu0 }
 0x15b   :  { %4714 = vst [vmem:[#allocation67_spill] sm:$0xff] %v4126_v3  ;;  %4715 = vst [vmem:[#allocation68_spill] sm:$0xff] %v4128_v14  ;;  %v4130_v19 = vpop.f32.mrf.mxu1  ;;  %v3347_v60 = vpop.eup %3346  ;;  %v1364_v1 = vadd.f32 1.0, %v3345_v32  ;;  %3372 = vpow2.f32 %v2661_v0 }
 0x15c   :  { %4716 = vst [vmem:[#allocation69_spill] sm:$0xff] %v4130_v19  ;;  %v3349_v37 = vpop.eup %3348  ;;  %v1342_v15 = vadd.f32 1.0, %v3347_v60  ;;  %3374 = vpow2.f32 %v2663_v10  ;;  %v4134_v50 = vpop.f32.mrf.mxu0 }
 0x15d   :  { %4717 = vst [vmem:[#allocation70_spill] sm:$0xff] %v4134_v50  ;;  %v4136_v26 = vpop.f32.mrf.mxu1  ;;  %v3351_v31 = vpop.eup %3350  ;;  %3376 = vrcp.f32 %v1364_v1  ;;  %v1365_v13 = vadd.f32 1.0, %v3349_v37 }
 0x15e   :  { %v3353_v46 = vpop.eup %3352  ;;  %3378 = vrcp.f32 %v1342_v15  ;;  %v1367_v14 = vadd.f32 1.0, %v3351_v31  ;;  %v4138_v19 = vpop.f32.mrf.mxu0 }
 0x15f   :  { %4718 = vst [vmem:[#allocation71_spill] sm:$0xff] %v4138_v19  ;;  %v4140_v32 = vpop.f32.mrf.mxu1  ;;  %v3355_v0 = vpop.eup %3354  ;;  %3380 = vrcp.f32 %v1365_v13  ;;  %v1345_v25 = vadd.f32 1.0, %v3353_v46 }
 0x160   :  { %4719 = vst [vmem:[#allocation72_spill] sm:$0xff] %v4140_v32  ;;  %v3357_v49 = vpop.eup %3356  ;;  %3382 = vrcp.f32 %v1367_v14  ;;  %v1368_v60 = vadd.f32 1.0, %v3355_v0  ;;  %v4142_v10 = vpop.f32.mrf.mxu0 }
 0x161   :  { %4720 = vst [vmem:[#allocation73_spill] sm:$0xff] %v4142_v10  ;;  %v4144_v50 = vpop.f32.mrf.mxu1  ;;  %v3359_v3 = vpop.eup %3358  ;;  %3384 = vrcp.f32 %v1345_v25  ;;  %v1370_v37 = vadd.f32 1.0, %v3357_v49 }
 0x162   :  { %v3361_v1 = vpop.eup %3360  ;;  %3386 = vrcp.f32 %v1368_v60  ;;  %v1348_v15 = vadd.f32 1.0, %v3359_v3  ;;  %v4146_v31 = vpop.f32.mrf.mxu0 }
 0x163   :  { %4721 = vst [vmem:[#allocation74_spill] sm:$0xff] %v4146_v31  ;;  %v4148_v19 = vpop.f32.mrf.mxu1  ;;  %v3363_v32 = vpop.eup %3362  ;;  %3388 = vrcp.f32 %v1370_v37  ;;  %v1371_v13 = vadd.f32 1.0, %v3361_v1 }
 0x164   :  { %4722 = vst [vmem:[#allocation75_spill] sm:$0xff] %v4148_v19  ;;  %v3365_v46 = vpop.eup %3364  ;;  %3390 = vrcp.f32 %v1348_v15  ;;  %v1373_v14 = vadd.f32 1.0, %v3363_v32  ;;  %v4150_v0 = vpop.f32.mrf.mxu0 }
 0x165   :  { %4723 = vst [vmem:[#allocation76_spill] sm:$0xff] %v4150_v0  ;;  %v4152_v10 = vpop.f32.mrf.mxu1  ;;  %v3367_v63 = vpop.eup %3366  ;;  %3392 = vrcp.f32 %v1371_v13  ;;  %v1351_v49 = vadd.f32 1.0, %v3365_v46  ;;  %v2641_v46 = vmul.f32 -1.442695, %v4010_v33 }
 0x166   :  { %4724 = vst [vmem:[#allocation77_spill] sm:$0xff] %v4152_v10  ;;  %v3369_v25 = vpop.eup %3368  ;;  %3394 = vrcp.f32 %v1373_v14  ;;  %v1374_v3 = vadd.f32 1.0, %v3367_v63  ;;  %v4154_v60 = vpop.f32.mrf.mxu0 }
 0x167   :  { %4725 = vst [vmem:[#allocation78_spill] sm:$0xff] %v4154_v60  ;;  %v4156_v31 = vpop.f32.mrf.mxu1  ;;  %v3371_v19 = vpop.eup %3370  ;;  %3396 = vrcp.f32 %v1351_v49  ;;  %v1376_v37 = vadd.f32 1.0, %v3369_v25 }
 0x168   :  { %4726 = vst [vmem:[#allocation79_spill] sm:$0xff] %v4156_v31  ;;  %v3373_v1 = vpop.eup %3372  ;;  %3398 = vrcp.f32 %v1374_v3  ;;  %v1354_v32 = vadd.f32 1.0, %v3371_v19  ;;  %v4158_v15 = vpop.f32.mrf.mxu0  ;;  %v2664_v31 = vmul.f32 -1.442695, %v4012_v52  ;;  %v1629_v19 = vmul.f32 %v3948_v27, %v3847_v18 }
 0x169   :  { %4727 = vst [vmem:[#allocation80_spill] sm:$0xff] %v4158_v15  ;;  %v4160_v0 = vpop.f32.mrf.mxu1  ;;  %v3375_v10 = vpop.eup %3374  ;;  %3400 = vrcp.f32 %v1376_v37  ;;  %v1377_v13 = vadd.f32 1.0, %v3373_v1  ;;  %v2666_v3 = vmul.f32 -1.442695, %v4018_v35  ;;  %v2644_v1 = vmul.f32 -1.442695, %v4020_v11 }
 0x16a   :  { %4728 = vst [vmem:[#allocation81_spill] sm:$0xff] %v4160_v0  ;;  %v3377_v63 = vpop.eup %3376  ;;  %3402 = vrcp.f32 %v1354_v32  ;;  %v1379_v14 = vadd.f32 1.0, %v3375_v10  ;;  %v893_v49 = vpop.f32.mrf.mxu0  ;;  %v2667_v18 = vmul.f32 -1.442695, %v4022_v61  ;;  %v2669_v27 = vmul.f32 -1.442695, %v4028_v30 }
 0x16b   :  { %v4164_v60 = vpop.f32.mrf.mxu1  ;;  %v3379_v25 = vpop.eup %3378  ;;  %3404 = vrcp.f32 %v1377_v13  ;;  %v1652_v37 = vmul.f32 %v3377_v63, %v3927_v54  ;;  %v2647_v13 = vmul.f32 -1.442695, %v4030_v42  ;;  %v2670_v63 = vmul.f32 -1.442695, %v4032_v5 }
 0x16c   :  { %4729 = vst [vmem:[#allocation82_spill] sm:$0xff] %v4164_v60  ;;  %v4169_v0 = vpop.eup %3380  ;;  %3406 = vrcp.f32 %v1379_v14  ;;  %v895_v32 = vpop.f32.mrf.mxu0  ;;  %v1632_v60 = vmul.f32 %v3969_v2, %v3859_v28  ;;  %v1725_v14 = vmul.f32 %v1629_v19, %v893_v49  ;;  %v1630_v28 = vmul.f32 %v3379_v25, %v3929_v57 }
 0x16d   :  { %v4173_v10 = vpop.f32.mrf.mxu1  ;;  %v3383_v52 = vpop.eup %3382  ;;  %3408 = vpow2.f32 %v2641_v46  ;;  %v2672_v30 = vmul.f32 -1.442695, %v4040_v20 }
 0x16e   :  { %4730 = vst [vmem:[#allocation83_spill] sm:$0xff] %v4173_v10  ;;  %v3385_v35 = vpop.eup %3384  ;;  %v1655_v54 = vmul.f32 %v3383_v52, %v3938_v8  ;;  %3410 = vpow2.f32 %v2664_v31  ;;  %v897_v15 = vpop.f32.mrf.mxu0  ;;  %v4190_v8 = vmul.f32 %v1652_v37, %v4052_v34  ;;  %v1726_v57 = vmul.f32 %v1630_v28, %v895_v32 }
 0x16f   :  { %v4182_v10 = vpop.f32.mrf.mxu1  ;;  %v4184_v11 = vpop.eup %3386  ;;  %v1633_v2 = vmul.f32 %v3385_v35, %v3940_v9  ;;  %3412 = vpow2.f32 %v2666_v3  ;;  %v1728_v46 = vmul.f32 %v1632_v60, %v897_v15  ;;  %v2650_v15 = vmul.f32 -1.442695, %v4042_v29 }
 0x170   :  { %v3389_v61 = vpop.eup %3388  ;;  %3414 = vpow2.f32 %v2644_v1  ;;  %v4193_v52 = vmul.f32 %v1655_v54, %v4072_v59  ;;  %v899_v49 = vpop.f32.mrf.mxu0  ;;  %v1635_v1 = vmul.f32 %v3986_v58, %v3873_v38  ;;  %v2673_v32 = vmul.f32 -1.442695, %v4050_v53 }
 0x171   :  { %v4195_v31 = vpop.f32.mrf.mxu1  ;;  %v3391_v19 = vpop.eup %3390  ;;  %3416 = vpow2.f32 %v2667_v18  ;;  %v1821_v25 = vpack.c.bf16 %v1728_v46, %v1725_v14  ;;  %v1729_v35 = vmul.f32 %v1633_v2, %v899_v49  ;;  %v1658_v60 = vmul.f32 %v3389_v61, %v3956_v41 }
 0x172   :  { %v4197_v9 = vpop.eup %3392  ;;  %3418 = vpow2.f32 %v2669_v27  ;;  %v903_v3 = vpop.f32.mrf.mxu0  ;;  %v2675_v41 = vmul.f32 -1.442695, %v4059_v62  ;;  %v4732_v28 = vpack.c.bf16 %v3953_v36, %v3951_v48  ;;  %v1638_v38 = vmul.f32 %v4026_v21, %v3884_v44 }
 0x173   :  { %v4203_v59 = vpop.f32.mrf.mxu1  ;;  %v3395_v37 = vpop.eup %3394  ;;  %3420 = vpow2.f32 %v2647_v13  ;;  %v1822_v18 = vpack.c.bf16 %v1729_v35, %v1726_v57  ;;  %2092 = vmatprep.mubr.bf16.mxu1 %v1821_v25  ;;  %v2653_v13 = vmul.f32 -1.442695, %v4061_v40  ;;  %v2656_v46 = vmul.f32 -1.442695, %v4086_v22 }
 0x174   :  { %v3397_v54 = vpop.eup %3396  ;;  %v1661_v61 = vmul.f32 %v3395_v37, %v3974_v16  ;;  %3422 = vpow2.f32 %v2670_v63  ;;  %v905_v14 = vpop.f32.mrf.mxu0  ;;  %2093 = vmatmul.mubr.bf16.vlgmr.msra.gmra.mxu1 %v4732_v28  ;;  %v2676_v16 = vmul.f32 -1.442695, %v4070_v47  ;;  %v2678_v63 = vmul.f32 -1.442695, %v4084_v23  ;;  %v4766_v23 = vld [vmem:[#allocation46_spill] sm:$0xff] }
 0x175   :  { %v4210_v27 = vpop.f32.mrf.mxu1  ;;  %v4217_v58 = vpop.eup %3398  ;;  %3424 = vpow2.f32 %v2672_v30  ;;  %3055 = vmatprep.mubr.bf16.mxu0 %v1822_v18  ;;  %v4224_v48 = vmul.f32 %v1658_v60, %v4098_v24  ;;  %v1731_v57 = vmul.f32 %v1635_v1, %v903_v3  ;;  %v1639_v24 = vmul.f32 %v3397_v54, %v3976_v17 }
 0x176   :  { %4731 = vst [vmem:[#allocation84_spill] sm:$0xff] %v4210_v27  ;;  %v3401_v2 = vpop.eup %3400  ;;  %3426 = vpow2.f32 %v2650_v15  ;;  %v4227_v36 = vmul.f32 %v1661_v61, %v4118_v6  ;;  %v907_v21 = vpop.f32.mrf.mxu0  ;;  %v1636_v15 = vmul.f32 %v3391_v19, %v3958_v43  ;;  %v4754_v6 = vld [vmem:[#allocation35_spill] sm:$0xff] }
 0x177   :  { %v4229_v44 = vpop.f32.mrf.mxu1  ;;  %v4231_v30 = vpop.eup %3402  ;;  %v1664_v49 = vmul.f32 %v3401_v2, %v3993_v7  ;;  %3428 = vpow2.f32 %v2673_v32  ;;  %v1734_v25 = vmul.f32 %v1638_v38, %v907_v21  ;;  %v4735_v2 = vpack.c.bf16 %v3990_v39, %v3988_v45 }
 0x178   :  { %v4234_v35 = vpop.eup %3404  ;;  %3430 = vpow2.f32 %v2675_v41  ;;  %v909_v37 = vpop.f32.mrf.mxu0  ;;  %v1732_v1 = vmul.f32 %v1636_v15, %v905_v14  ;;  %v4753_v15 = vld [vmem:[#allocation14_spill] sm:$0xff] }
 0x179   :  { %v4240_v60 = vpop.f32.mrf.mxu1  ;;  %v3407_v18 = vpop.eup %3406  ;;  %3432 = vpow2.f32 %v2653_v13  ;;  %v1824_v61 = vpack.c.bf16 %v1734_v25, %v1731_v57  ;;  %v1735_v32 = vmul.f32 %v1639_v24, %v909_v37  ;;  %v4246_v54 = vmul.f32 %v1664_v49, %v4136_v26  ;;  %v4736_v26 = vld [vmem:[#allocation55_spill] sm:$0xff] }
 0x17a   :  { %4733 = vst [vmem:[#allocation85_spill] sm:$0xff] %v4240_v60  ;;  %v3409_v7 = vpop.eup %3408  ;;  %v1667_v3 = vmul.f32 %v3407_v18, %v4008_v56  ;;  %3434 = vpow2.f32 %v2676_v16  ;;  %v913_v43 = vpop.f32.mrf.mxu0  ;;  %v1641_v21 = vmul.f32 %v4736_v26, %v3896_v55  ;;  %v4737_v57 = vld [vmem:[#allocation23_spill] sm:$0xff]  ;;  %v1703_v34 = vmul.f32 %v4754_v6, %v4753_v15 }
 0x17b   :  { %v4243_v28 = vpop.f32.mrf.mxu1  ;;  %v3411_v17 = vpop.eup %3410  ;;  %v1357_v19 = vadd.f32 1.0, %v3409_v7  ;;  %3436 = vpow2.f32 %v2678_v63  ;;  %2100 = vmatprep.mubr.bf16.mxu1 %v1824_v61  ;;  %v1825_v56 = vpack.c.bf16 %v1735_v32, %v1732_v1  ;;  %v4760_v6 = vld [vmem:[#allocation31_spill] sm:$0xff] }
 0x17c   :  { %v3413_v41 = vpop.eup %3412  ;;  %v1380_v38 = vadd.f32 1.0, %v3411_v17  ;;  %3438 = vpow2.f32 %v2656_v46  ;;  %v4249_v13 = vmul.f32 %v1667_v3, %v4144_v50  ;;  %v4253_v14 = vpop.f32.mrf.mxu0  ;;  %2101 = vmatmul.mubr.bf16.gmra.mxu1 %v4735_v2  ;;  %v1644_v46 = vmul.f32 %v4093_v12, %v4737_v57  ;;  %v4740_v57 = vld [vmem:[#allocation57_spill] sm:$0xff] }
 0x17d   :  { %v4251_v16 = vpop.f32.mrf.mxu1  ;;  %v3415_v63 = vpop.eup %3414  ;;  %3440 = vrcp.f32 %v1357_v19  ;;  %v1382_v49 = vadd.f32 1.0, %v3413_v41  ;;  %3056 = vmatmul.mubr.bf16.vlgmr.msra.gmra.mxu0 %v1825_v56  ;;  %v1737_v18 = vmul.f32 %v1641_v21, %v913_v43  ;;  %v1653_v15 = vmul.f32 %v4169_v0, %v4760_v6 }
 0x17e   :  { %4734 = vst [vmem:[#allocation86_spill] sm:$0xff] %v4251_v16  ;;  %v3417_v50 = vpop.eup %3416  ;;  %3442 = vrcp.f32 %v1380_v38  ;;  %v1360_v25 = vadd.f32 1.0, %v3415_v63  ;;  %v917_v39 = vpop.f32.mrf.mxu0 }
 0x17f   :  { %v4264_v24 = vpop.f32.mrf.mxu1  ;;  %v3419_v45 = vpop.eup %3418  ;;  %3444 = vrcp.f32 %v1382_v49  ;;  %v1383_v37 = vadd.f32 1.0, %v3417_v50  ;;  %v1740_v55 = vmul.f32 %v1644_v46, %v917_v39  ;;  %v4741_v46 = vld [vmem:[#allocation56_spill] sm:$0xff]  ;;  %v4743_v39 = vld [vmem:[#allocation26_spill] sm:$0xff] }
 0x180   :  { %v3421_v61 = vpop.eup %3420  ;;  %3446 = vrcp.f32 %v1360_v25  ;;  %v1385_v7 = vadd.f32 1.0, %v3419_v45  ;;  %v4268_v12 = vpop.f32.mrf.mxu0  ;;  %v4742_v50 = vpack.c.bf16 %v4740_v57, %v4741_v46  ;;  %v1647_v45 = vmul.f32 %v4109_v51, %v4743_v39 }
 0x181   :  { %v4266_v3 = vpop.f32.mrf.mxu1  ;;  %v3423_v1 = vpop.eup %3422  ;;  %3448 = vrcp.f32 %v1383_v37  ;;  %v1363_v32 = vadd.f32 1.0, %v3421_v61  ;;  %v1827_v17 = vpack.c.bf16 %v1740_v55, %v1737_v18  ;;  %v4744_v18 = vld [vmem:[#allocation29_spill] sm:$0xff] }
 0x182   :  { %4738 = vst [vmem:[#allocation55_spill] sm:$0xff] %v4266_v3  ;;  %v3425_v19 = vpop.eup %3424  ;;  %3450 = vrcp.f32 %v1385_v7  ;;  %v1386_v41 = vadd.f32 1.0, %v3423_v1  ;;  %v923_v56 = vpop.f32.mrf.mxu0  ;;  %v1650_v55 = vmul.f32 %v4120_v4, %v4744_v18 }
 0x183   :  { %v4270_v38 = vpop.f32.mrf.mxu1  ;;  %v3427_v2 = vpop.eup %3426  ;;  %3452 = vrcp.f32 %v1363_v32  ;;  %v1388_v43 = vadd.f32 1.0, %v3425_v19  ;;  %2108 = vmatprep.mubr.bf16.mxu1 %v1827_v17 }
 0x184   :  { %v3429_v63 = vpop.eup %3428  ;;  %3454 = vrcp.f32 %v1386_v41  ;;  %v1366_v26 = vadd.f32 1.0, %v3427_v2  ;;  %v4274_v49 = vpop.f32.mrf.mxu0  ;;  %2109 = vmatmul.mubr.bf16.gmra.mxu1 %v4742_v50  ;;  %v1743_v41 = vmul.f32 %v1647_v45, %v923_v56 }
 0x185   :  { %v4272_v21 = vpop.f32.mrf.mxu1  ;;  %v3431_v25 = vpop.eup %3430  ;;  %3456 = vrcp.f32 %v1388_v43  ;;  %v1389_v37 = vadd.f32 1.0, %v3429_v63 }
 0x186   :  { %4739 = vst [vmem:[#allocation23_spill] sm:$0xff] %v4272_v21  ;;  %v3433_v61 = vpop.eup %3432  ;;  %3458 = vrcp.f32 %v1366_v26  ;;  %v1391_v7 = vadd.f32 1.0, %v3431_v25  ;;  %v927_v32 = vpop.f32.mrf.mxu0  ;;  %v4746_v26 = vld [vmem:[#allocation60_spill] sm:$0xff]  ;;  %v4755_v21 = vld [vmem:[#allocation65_spill] sm:$0xff] }
 0x187   :  { %v4283_v1 = vpop.f32.mrf.mxu1  ;;  %v3435_v17 = vpop.eup %3434  ;;  %3460 = vrcp.f32 %v1389_v37  ;;  %v1369_v19 = vadd.f32 1.0, %v3433_v61  ;;  %v1746_v2 = vmul.f32 %v1650_v55, %v927_v32  ;;  %v2679_v50 = vmul.f32 -1.442695, %v4746_v26  ;;  %v4747_v37 = vld [vmem:[#allocation62_spill] sm:$0xff] }
 0x188   :  { %v3437_v57 = vpop.eup %3436  ;;  %3462 = vrcp.f32 %v1391_v7  ;;  %v1392_v46 = vadd.f32 1.0, %v3435_v17  ;;  %v4287_v43 = vpop.f32.mrf.mxu0  ;;  %v2681_v61 = vmul.f32 -1.442695, %v4747_v37  ;;  %v4749_v7 = vld [vmem:[#allocation40_spill] sm:$0xff] }
 0x189   :  { %v4285_v51 = vpop.f32.mrf.mxu1  ;;  %v3439_v63 = vpop.eup %3438  ;;  %3464 = vrcp.f32 %v1369_v19  ;;  %v1394_v4 = vadd.f32 1.0, %v3437_v57  ;;  %v1830_v25 = vpack.c.bf16 %v1746_v2, %v1743_v41  ;;  %v1642_v32 = vmul.f32 %v4231_v30, %v4749_v7  ;;  %v4750_v19 = vld [vmem:[#allocation63_spill] sm:$0xff]  ;;  %v4751_v2 = vld [vmem:[#allocation12_spill] sm:$0xff] }
 0x18a   :  { %4745 = vst [vmem:[#allocation57_spill] sm:$0xff] %v4285_v51  ;;  %v3441_v39 = vpop.eup %3440  ;;  %3466 = vrcp.f32 %v1392_v46  ;;  %v1372_v18 = vadd.f32 1.0, %v3439_v63  ;;  %v933_v45 = vpop.f32.mrf.mxu0  ;;  %v2659_v57 = vmul.f32 -1.442695, %v4750_v19  ;;  %v4752_v46 = vld [vmem:[#allocation32_spill] sm:$0xff]  ;;  %v4756_v30 = vld [vmem:[#allocation67_spill] sm:$0xff] }
 0x18b   :  { %v4291_v56 = vpop.f32.mrf.mxu1  ;;  %v4293_v55 = vpop.eup %3442  ;;  %v1645_v17 = vmul.f32 %v3441_v39, %v4010_v33  ;;  %3468 = vrcp.f32 %v1394_v4  ;;  %2116 = vmatprep.mubr.bf16.mxu1 %v1830_v25  ;;  %v1700_v63 = vmul.f32 %v4752_v46, %v4751_v2  ;;  %v2682_v51 = vmul.f32 -1.442695, %v4755_v21  ;;  %v4757_v33 = vld [vmem:[#allocation66_spill] sm:$0xff]  ;;  %v4759_v25 = vld [vmem:[#allocation68_spill] sm:$0xff] }
 0x18c   :  { %4748 = vst [vmem:[#allocation56_spill] sm:$0xff] %v4291_v56  ;;  %v4299_v41 = vpop.eup %3444  ;;  %3470 = vrcp.f32 %v1372_v18  ;;  %v4306_v3 = vpop.f32.mrf.mxu0  ;;  %v4758_v4 = vpack.c.bf16 %v4756_v30, %v4757_v33  ;;  %v2684_v7 = vmul.f32 -1.442695, %v4759_v25  ;;  %v1738_v27 = vmul.f32 %v1642_v32, %v4253_v14  ;;  %v4761_v18 = vld [vmem:[#allocation69_spill] sm:$0xff]  ;;  %v4762_v21 = vld [vmem:[#allocation70_spill] sm:$0xff] }
 0x18d   :  { %v822_v16 = vpop.f32.mrf.mxu1  ;;  %v3447_v39 = vpop.eup %3446  ;;  %3472 = vpow2.f32 %v2679_v50  ;;  %v1741_v2 = vmul.f32 %v1645_v17, %v4268_v12  ;;  %v2662_v60 = vmul.f32 -1.442695, %v4761_v18  ;;  %v2685_v26 = vmul.f32 -1.442695, %v4762_v21  ;;  %v4765_v12 = vld [vmem:[#allocation33_spill] sm:$0xff] }
 0x18e   :  { %2117 = vmatmul.mubr.bf16.gmra.mxu1 %v4758_v4  ;;  %v4314_v46 = vpop.eup %3448  ;;  %3474 = vpow2.f32 %v2681_v61  ;;  %v937_v33 = vpop.f32.mrf.mxu0  ;;  %v4764_v4 = vld [vmem:[#allocation71_spill] sm:$0xff]  ;;  %v1656_v17 = vmul.f32 %v4184_v11, %v4765_v12  ;;  %v1648_v0 = vmul.f32 %v3447_v39, %v4766_v23  ;;  %v4767_v61 = vld [vmem:[#allocation72_spill] sm:$0xff]  ;;  %v1749_v18 = vmul.f32 %v1653_v15, %v933_v45  ;;  %v4769_v11 = vld [vmem:[#allocation73_spill] sm:$0xff] }
 0x18f   :  { %v4320_v30 = vpop.f32.mrf.mxu1  ;;  %v4322_v50 = vpop.eup %3450  ;;  %3476 = vpow2.f32 %v2659_v57  ;;  %v2687_v14 = vmul.f32 -1.442695, %v4764_v4  ;;  %v1828_v32 = vpack.c.bf16 %v1741_v2, %v1738_v27  ;;  %v2665_v6 = vmul.f32 -1.442695, %v4767_v61 }
 0x190   :  { %4763 = vst [vmem:[#allocation26_spill] sm:$0xff] %v4320_v30  ;;  %v3453_v25 = vpop.eup %3452  ;;  %3478 = vpow2.f32 %v2682_v51  ;;  %v939_v37 = vpop.f32.mrf.mxu0  ;;  %v1752_v57 = vmul.f32 %v1656_v17, %v937_v33  ;;  %v2688_v23 = vmul.f32 -1.442695, %v4769_v11  ;;  %v4770_v51 = vld [vmem:[#allocation74_spill] sm:$0xff]  ;;  %v4338_v12 = vmul.f32 %v1700_v63, %v822_v16 }
 0x191   :  { %v826_v21 = vpop.f32.mrf.mxu1  ;;  %v4329_v30 = vpop.eup %3454  ;;  %v1651_v56 = vmul.f32 %v3453_v25, %v4030_v42  ;;  %3480 = vpow2.f32 %v2684_v7  ;;  %3059 = vmatprep.mubr.bf16.mxu0 %v1828_v32  ;;  %v2690_v39 = vmul.f32 -1.442695, %v4770_v51  ;;  %v1744_v42 = vmul.f32 %v1648_v0, %v4274_v49  ;;  %v4777_v51 = vld [vmem:[#allocation79_spill] sm:$0xff] }
 0x192   :  { %v4332_v27 = vmul.f32 %v1703_v34, %v826_v21  ;;  %v4334_v2 = vpop.eup %3456  ;;  %3482 = vpow2.f32 %v2662_v60  ;;  %4771 = vst [vmem:[#allocation40_spill] sm:$0xff] %v4338_v12  ;;  %v943_v15 = vpop.f32.mrf.mxu0  ;;  %v1833_v34 = vpack.c.bf16 %v1752_v57, %v1749_v18  ;;  %v4772_v60 = vld [vmem:[#allocation75_spill] sm:$0xff]  ;;  %v4775_v18 = vld [vmem:[#allocation38_spill] sm:$0xff]  ;;  %v2671_v11 = vmul.f32 -1.442695, %v4777_v51 }
 0x193   :  { %v4340_v45 = vpop.f32.mrf.mxu1  ;;  %v3459_v4 = vpop.eup %3458  ;;  %3484 = vpow2.f32 %v2685_v26  ;;  %v1747_v25 = vmul.f32 %v1651_v56, %v4287_v43  ;;  %v2668_v7 = vmul.f32 -1.442695, %v4772_v60  ;;  %v4773_v26 = vld [vmem:[#allocation76_spill] sm:$0xff]  ;;  %v4778_v33 = vpack.c.bf16 %v4193_v52, %v4190_v8 }
 0x194   :  { %4768 = vst [vmem:[#allocation29_spill] sm:$0xff] %v4332_v27  ;;  %v4344_v21 = vpop.eup %3460  ;;  %3486 = vpow2.f32 %v2687_v14  ;;  %v4349_v63 = vpop.f32.mrf.mxu0  ;;  %v2691_v17 = vmul.f32 -1.442695, %v4773_v26  ;;  %2124 = vmatprep.mubr.bf16.mxu1 %v1833_v34  ;;  %v4774_v56 = vld [vmem:[#allocation16_spill] sm:$0xff]  ;;  %v4776_v14 = vld [vmem:[#allocation78_spill] sm:$0xff] }
 0x195   :  { %v832_v16 = vpop.f32.mrf.mxu1  ;;  %v4351_v32 = vpop.eup %3462  ;;  %3488 = vpow2.f32 %v2665_v6  ;;  %v1831_v49 = vpack.c.bf16 %v1747_v25, %v1744_v42  ;;  %v1706_v0 = vmul.f32 %v4775_v18, %v4774_v56  ;;  %v2693_v57 = vmul.f32 -1.442695, %v4776_v14  ;;  %v4781_v18 = vld [vmem:[#allocation18_spill] sm:$0xff]  ;;  %v4782_v14 = vld [vmem:[#allocation44_spill] sm:$0xff] }
 0x196   :  { %v3465_v43 = vpop.eup %3464  ;;  %3490 = vpow2.f32 %v2688_v23  ;;  %2125 = vmatmul.mubr.bf16.gmra.mxu1 %v4778_v33  ;;  %v947_v6 = vpop.f32.mrf.mxu0  ;;  %v1654_v42 = vmul.f32 %v3459_v4, %v4042_v29  ;;  %v4780_v23 = vld [vmem:[#allocation39_spill] sm:$0xff]  ;;  %v1709_v8 = vmul.f32 %v4782_v14, %v4781_v18  ;;  %v4783_v52 = vld [vmem:[#allocation36_spill] sm:$0xff] }
 0x197   :  { %v4361_v12 = vpop.f32.mrf.mxu1  ;;  %v4363_v27 = vpop.eup %3466  ;;  %v1657_v25 = vmul.f32 %v3465_v43, %v4061_v40  ;;  %3492 = vpow2.f32 %v2690_v39  ;;  %3060 = vmatmul.mubr.bf16.gmra.mxu0 %v1831_v49  ;;  %v1662_v34 = vmul.f32 %v4217_v58, %v4780_v23  ;;  %v1659_v33 = vmul.f32 %v4197_v9, %v4783_v52  ;;  %v4784_v26 = vld [vmem:[#allocation80_spill] sm:$0xff] }
 0x198   :  { %4779 = vst [vmem:[#allocation63_spill] sm:$0xff] %v4361_v12  ;;  %v4369_v56 = vpop.eup %3468  ;;  %3494 = vpow2.f32 %v2668_v7  ;;  %v2694_v51 = vmul.f32 -1.442695, %v4784_v26  ;;  %v4376_v29 = vpop.f32.mrf.mxu0  ;;  %v1750_v4 = vmul.f32 %v1654_v42, %v4306_v3  ;;  %v4385_v26 = vmul.f32 %v1706_v0, %v832_v16 }
 0x199   :  { %v836_v60 = vpop.f32.mrf.mxu1  ;;  %v4378_v40 = vpop.eup %3470  ;;  %3496 = vpow2.f32 %v2691_v17  ;;  %v1753_v58 = vmul.f32 %v1657_v25, %v939_v37  ;;  %v1758_v39 = vmul.f32 %v1662_v34, %v947_v6  ;;  %v1755_v43 = vmul.f32 %v1659_v33, %v943_v15  ;;  %v4785_v17 = vld [vmem:[#allocation42_spill] sm:$0xff]  ;;  %v4786_v25 = vld [vmem:[#allocation43_spill] sm:$0xff]  ;;  %v4787_v34 = vld [vmem:[#allocation20_spill] sm:$0xff] }
 0x19a   :  { %v3473_v49 = vpop.eup %3472  ;;  %3498 = vpow2.f32 %v2693_v57  ;;  %v4381_v14 = vmul.f32 %v1709_v8, %v836_v60  ;;  %v953_v9 = vpop.f32.mrf.mxu0  ;;  %v1665_v3 = vmul.f32 %v4234_v35, %v4785_v17  ;;  %v1668_v16 = vmul.f32 %v4293_v55, %v4786_v25  ;;  %v4788_v8 = vld [vmem:[#allocation54_spill] sm:$0xff] }
 0x19b   :  { %v4383_v23 = vpop.f32.mrf.mxu1  ;;  %v3475_v7 = vpop.eup %3474  ;;  %v1395_v18 = vadd.f32 1.0, %v3473_v49  ;;  %3500 = vpow2.f32 %v2671_v11  ;;  %v1834_v52 = vpack.c.bf16 %v1753_v58, %v1750_v4  ;;  %v1836_v6 = vpack.c.bf16 %v1758_v39, %v1755_v43  ;;  %v4789_v33 = vld [vmem:[#allocation22_spill] sm:$0xff] }
 0x19c   :  { %v3477_v12 = vpop.eup %3476  ;;  %v1397_v37 = vadd.f32 1.0, %v3475_v7  ;;  %3502 = vpow2.f32 %v2694_v51  ;;  %v4389_v15 = vpop.f32.mrf.mxu0  ;;  %v1712_v35 = vmul.f32 %v4788_v8, %v4787_v34  ;;  %v4790_v51 = vld [vmem:[#allocation59_spill] sm:$0xff]  ;;  %v1761_v7 = vmul.f32 %v1665_v3, %v953_v9  ;;  %v4794_v3 = vld [vmem:[#allocation25_spill] sm:$0xff] }
 0x19d   :  { %v842_v57 = vpop.f32.mrf.mxu1  ;;  %v3479_v60 = vpop.eup %3478  ;;  %3504 = vrcp.f32 %v1395_v18  ;;  %v1375_v42 = vadd.f32 1.0, %v3477_v12  ;;  %3063 = vmatprep.mubr.bf16.mxu0 %v1834_v52  ;;  %v1715_v4 = vmul.f32 %v4790_v51, %v4789_v33  ;;  %2132 = vmatprep.mubr.bf16.mxu1 %v1836_v6  ;;  %v4791_v55 = vpack.c.bf16 %v4227_v36, %v4224_v48  ;;  %v4796_v36 = vld [vmem:[#allocation28_spill] sm:$0xff] }
 0x19e   :  { %v3481_v0 = vpop.eup %3480  ;;  %3506 = vrcp.f32 %v1397_v37  ;;  %v1398_v58 = vadd.f32 1.0, %v3479_v60  ;;  %v957_v12 = vpop.f32.mrf.mxu0  ;;  %v4404_v25 = vmul.f32 %v1712_v35, %v842_v57 }
 0x19f   :  { %v4399_v39 = vpop.f32.mrf.mxu1  ;;  %v3483_v49 = vpop.eup %3482  ;;  %3508 = vrcp.f32 %v1375_v42  ;;  %v1400_v43 = vadd.f32 1.0, %v3481_v0  ;;  %2133 = vmatmul.mubr.bf16.gmra.mxu1 %v4791_v55  ;;  %v1764_v18 = vmul.f32 %v1668_v16, %v957_v12  ;;  %v4795_v0 = vld [vmem:[#allocation61_spill] sm:$0xff]  ;;  %v4797_v16 = vld [vmem:[#allocation64_spill] sm:$0xff] }
 0x1a0   :  { %v3485_v52 = vpop.eup %3484  ;;  %3510 = vrcp.f32 %v1398_v58  ;;  %v1378_v17 = vadd.f32 1.0, %v3483_v49  ;;  %4792 = vst [vmem:[#allocation12_spill] sm:$0xff] %v4404_v25  ;;  %v4406_v60 = vpop.f32.mrf.mxu0  ;;  %v1718_v48 = vmul.f32 %v4795_v0, %v4794_v3  ;;  %v1721_v33 = vmul.f32 %v4797_v16, %v4796_v36  ;;  %v4798_v49 = vld [vmem:[#allocation82_spill] sm:$0xff]  ;;  %v4799_v55 = vld [vmem:[#allocation48_spill] sm:$0xff]  ;;  %v4801_v16 = vld [vmem:[#allocation45_spill] sm:$0xff] }
 0x1a1   :  { %v846_v37 = vpop.f32.mrf.mxu1  ;;  %v3487_v6 = vpop.eup %3486  ;;  %3512 = vrcp.f32 %v1400_v43  ;;  %v1401_v34 = vadd.f32 1.0, %v3485_v52  ;;  %v1839_v8 = vpack.c.bf16 %v1764_v18, %v1761_v7  ;;  %v2674_v43 = vmul.f32 -1.442695, %v4798_v49 }
 0x1a2   :  { %v4408_v42 = vmul.f32 %v1715_v4, %v846_v37  ;;  %v3489_v9 = vpop.eup %3488  ;;  %3514 = vrcp.f32 %v1378_v17  ;;  %v1403_v51 = vadd.f32 1.0, %v3487_v6  ;;  %v963_v35 = vpop.f32.mrf.mxu0  ;;  %v1673_v18 = vmul.f32 %v4322_v50, %v4799_v55 }
 0x1a3   :  { %v4414_v57 = vpop.f32.mrf.mxu1  ;;  %v3491_v58 = vpop.eup %3490  ;;  %3516 = vrcp.f32 %v1401_v34  ;;  %v1381_v12 = vadd.f32 1.0, %v3489_v9  ;;  %2140 = vmatprep.mubr.bf16.mxu1 %v1839_v8  ;;  %v2677_v17 = vmul.f32 -1.442695, %v4182_v10  ;;  %v4800_v34 = vld [vmem:[#allocation47_spill] sm:$0xff]  ;;  %v1674_v8 = vmul.f32 %v4329_v30, %v4032_v5 }
 0x1a4   :  { %4793 = vst [vmem:[#allocation32_spill] sm:$0xff] %v4408_v42  ;;  %v3493_v7 = vpop.eup %3492  ;;  %3518 = vrcp.f32 %v1403_v51  ;;  %v1404_v52 = vadd.f32 1.0, %v3491_v58  ;;  %v4422_v6 = vpop.f32.mrf.mxu0  ;;  %v1671_v9 = vmul.f32 %v4314_v46, %v4800_v34  ;;  %v1670_v50 = vmul.f32 %v4299_v41, %v4801_v16  ;;  %v4803_v41 = vld [vmem:[#allocation81_spill] sm:$0xff] }
 0x1a5   :  { %v852_v37 = vpop.f32.mrf.mxu1  ;;  %v3495_v3 = vpop.eup %3494  ;;  %3520 = vrcp.f32 %v1381_v12  ;;  %v1406_v0 = vadd.f32 1.0, %v3493_v7  ;;  %v2680_v58 = vmul.f32 -1.442695, %v4203_v59  ;;  %v4802_v12 = vpack.c.bf16 %v4249_v13, %v4246_v54  ;;  %v4804_v54 = vld [vmem:[#allocation77_spill] sm:$0xff] }
 0x1a6   :  { %v3497_v36 = vpop.eup %3496  ;;  %3522 = vrcp.f32 %v1404_v52  ;;  %v1384_v51 = vadd.f32 1.0, %v3495_v3  ;;  %v967_v4 = vpop.f32.mrf.mxu0  ;;  %v1767_v46 = vmul.f32 %v1671_v9, %v963_v35  ;;  %v1769_v52 = vmul.f32 %v1673_v18, %v4803_v41 }
 0x1a7   :  { %v4431_v55 = vpop.f32.mrf.mxu1  ;;  %v3499_v11 = vpop.eup %3498  ;;  %3524 = vrcp.f32 %v1406_v0  ;;  %v1407_v25 = vadd.f32 1.0, %v3497_v36  ;;  %2141 = vmatmul.mubr.bf16.gmra.mxu1 %v4802_v12  ;;  %v1770_v5 = vmul.f32 %v1674_v8, %v967_v4  ;;  %v4437_v3 = vmul.f32 %v1718_v48, %v852_v37 }
 0x1a8   :  { %v3501_v30 = vpop.eup %3500  ;;  %3526 = vrcp.f32 %v1384_v51  ;;  %v1409_v7 = vadd.f32 1.0, %v3499_v11  ;;  %v4439_v16 = vpop.f32.mrf.mxu0  ;;  %v1766_v13 = vmul.f32 %v1670_v50, %v4804_v54  ;;  %v2683_v11 = vmul.f32 -1.442695, %v4229_v44 }
 0x1a9   :  { %v856_v34 = vpop.f32.mrf.mxu1  ;;  %v3503_v42 = vpop.eup %3502  ;;  %3528 = vrcp.f32 %v1407_v25  ;;  %v1387_v0 = vadd.f32 1.0, %v3501_v30  ;;  %v1842_v36 = vpack.c.bf16 %v1770_v5, %v1767_v46  ;;  %v2686_v37 = vmul.f32 -1.442695, %v4243_v28 }
 0x1aa   :  { %v4441_v35 = vmul.f32 %v1721_v33, %v856_v34  ;;  %v4443_v9 = vpop.eup %3504  ;;  %3530 = vrcp.f32 %v1409_v7  ;;  %v1410_v4 = vadd.f32 1.0, %v3503_v42  ;;  %v973_v18 = vpop.f32.mrf.mxu0  ;;  %v2689_v8 = vmul.f32 -1.442695, %v4264_v24 }
 0x1ab   :  { %v3507_v48 = vpop.eup %3506  ;;  %3532 = vrcp.f32 %v1387_v0  ;;  %2148 = vmatprep.mubr.bf16.mxu1 %v1842_v36  ;;  %v1676_v51 = vmul.f32 %v4334_v2, %v4040_v20  ;;  %v1679_v42 = vmul.f32 %v4351_v32, %v4059_v62  ;;  %v1841_v50 = vpack.c.bf16 %v1769_v52, %v1766_v13  ;;  %v4806_v0 = vld [vmem:[#allocation83_spill] sm:$0xff]  ;;  %v4808_v13 = vld [vmem:[#allocation62_spill] sm:$0xff] }
 0x1ac   :  { %v1865_v25 = vpack.c.bf16 %v4441_v35, %v4437_v3  ;;  %v3509_v33 = vpop.eup %3508  ;;  %3534 = vrcp.f32 %v1410_v4  ;;  %v4455_v46 = vpop.f32.mrf.mxu0  ;;  %v1680_v5 = vmul.f32 %v4363_v27, %v4070_v47  ;;  %v1660_v30 = vmul.f32 %v4378_v40, %v4086_v22 }
 0x1ad   :  { %v3511_v12 = vpop.eup %3510  ;;  %v1663_v7 = vmul.f32 %v3509_v33, %v4750_v19  ;;  %3536 = vpow2.f32 %v2674_v43  ;;  %v1677_v20 = vmul.f32 %v4344_v21, %v4050_v53  ;;  %v2692_v62 = vmul.f32 -1.442695, %v4270_v38  ;;  %v4805_v53 = vld [vmem:[#allocation56_spill] sm:$0xff] }
 0x1ae   :  { %v4462_v41 = vpop.eup %3512  ;;  %3538 = vpow2.f32 %v2677_v17  ;;  %v2695_v2 = vmul.f32 -1.442695, %v4283_v1  ;;  %v977_v32 = vpop.f32.mrf.mxu0  ;;  %v1756_v47 = vmul.f32 %v1660_v30, %v4349_v63  ;;  %v1775_v40 = vmul.f32 %v1679_v42, %v4195_v31  ;;  %v4807_v63 = vld [vmem:[#allocation26_spill] sm:$0xff] }
 0x1af   :  { %v3515_v52 = vpop.eup %3514  ;;  %3540 = vpow2.f32 %v2680_v58  ;;  %v1759_v22 = vmul.f32 %v1663_v7, %v4376_v29  ;;  %2149 = vmatmul.mubr.bf16.gmra.mxu1 %v1841_v50  ;;  %v1776_v19 = vmul.f32 %v1680_v5, %v977_v32  ;;  %v2698_v21 = vmul.f32 -1.442695, %v4805_v53  ;;  %v4810_v5 = vld [vmem:[#allocation69_spill] sm:$0xff] }
 0x1b0   :  { %v4470_v27 = vpop.eup %3516  ;;  %3542 = vpow2.f32 %v2683_v11  ;;  %v1773_v43 = vmul.f32 %v1677_v20, %v973_v18  ;;  %v4474_v17 = vpop.f32.mrf.mxu0  ;;  %v1772_v58 = vmul.f32 %v1676_v51, %v4806_v0  ;;  %v2701_v36 = vmul.f32 -1.442695, %v4807_v63  ;;  %v4809_v18 = vld [vmem:[#allocation58_spill] sm:$0xff] }
 0x1b1   :  { %v4476_v34 = vpop.eup %3518  ;;  %3544 = vpow2.f32 %v2686_v37  ;;  %v1837_v29 = vpack.c.bf16 %v1759_v22, %v1756_v47  ;;  %v1685_v4 = vmul.f32 %v3507_v48, %v4808_v13  ;;  %v2704_v31 = vmul.f32 -1.442695, %v4340_v45  ;;  %v4811_v48 = vld [vmem:[#allocation63_spill] sm:$0xff]  ;;  %v4812_v22 = vld [vmem:[#allocation60_spill] sm:$0xff] }
 0x1b2   :  { %v3521_v54 = vpop.eup %3520  ;;  %3546 = vpow2.f32 %v2689_v8  ;;  %v1845_v11 = vpack.c.bf16 %v1776_v19, %v1773_v43  ;;  %v983_v33 = vpop.f32.mrf.mxu0  ;;  %v1682_v50 = vmul.f32 %v4369_v56, %v4809_v18  ;;  %v1666_v30 = vmul.f32 %v3515_v52, %v4810_v5  ;;  %v4813_v19 = vld [vmem:[#allocation65_spill] sm:$0xff] }
 0x1b3   :  { %v3523_v42 = vpop.eup %3522  ;;  %v1669_v51 = vmul.f32 %v3521_v54, %v4767_v61  ;;  %3548 = vpow2.f32 %v2692_v62  ;;  %3064 = vmatmul.mubr.bf16.gmra.mxu0 %v1837_v29  ;;  %v1844_v7 = vpack.c.bf16 %v1775_v40, %v1772_v58  ;;  %v2707_v8 = vmul.f32 -1.442695, %v4811_v48  ;;  %v4814_v43 = vld [vmem:[#allocation85_spill] sm:$0xff] }
 0x1b4   :  { %v4486_v37 = vpop.eup %3524  ;;  %3550 = vpow2.f32 %v2695_v2  ;;  %v2710_v20 = vmul.f32 -1.442695, %v4383_v23  ;;  %2156 = vmatprep.mubr.bf16.mxu1 %v1845_v11  ;;  %v4490_v32 = vpop.f32.mrf.mxu0  ;;  %v1762_v56 = vmul.f32 %v1666_v30, %v4389_v15  ;;  %v2713_v52 = vmul.f32 -1.442695, %v4399_v39  ;;  %v4817_v30 = vld [vmem:[#allocation79_spill] sm:$0xff] }
 0x1b5   :  { %v3527_v47 = vpop.eup %3526  ;;  %3552 = vpow2.f32 %v2698_v21  ;;  %v1765_v61 = vmul.f32 %v1669_v51, %v4406_v60  ;;  %v1683_v2 = vmul.f32 %v4443_v9, %v4812_v22  ;;  %v1686_v40 = vmul.f32 %v3511_v12, %v4813_v19  ;;  %v4815_v21 = vld [vmem:[#allocation84_spill] sm:$0xff]  ;;  %v4818_v19 = vld [vmem:[#allocation70_spill] sm:$0xff] }
 0x1b6   :  { %v4495_v62 = vpop.eup %3528  ;;  %v1781_v0 = vmul.f32 %v1685_v4, %v4814_v43  ;;  %3554 = vpow2.f32 %v2701_v36  ;;  %v987_v58 = vpop.f32.mrf.mxu0  ;;  %v1778_v54 = vmul.f32 %v1682_v50, %v4815_v21  ;;  %v2716_v13 = vmul.f32 -1.442695, %v4414_v57  ;;  %v4816_v36 = vld [vmem:[#allocation75_spill] sm:$0xff] }
 0x1b7   :  { %v4501_v29 = vpop.eup %3530  ;;  %3556 = vpow2.f32 %v2704_v31  ;;  %v1840_v15 = vpack.c.bf16 %v1765_v61, %v1762_v56  ;;  %2157 = vmatmul.mubr.bf16.gmra.mxu1 %v1844_v7  ;;  %v2719_v11 = vmul.f32 -1.442695, %v4431_v55  ;;  %v1779_v9 = vmul.f32 %v1683_v2, %v983_v33 }
 0x1b8   :  { %v3533_v60 = vpop.eup %3532  ;;  %3558 = vpow2.f32 %v2707_v8  ;;  %v1782_v18 = vmul.f32 %v1686_v40, %v987_v58  ;;  %v4506_v12 = vpop.f32.mrf.mxu0  ;;  %v1672_v5 = vmul.f32 %v3527_v47, %v4816_v36  ;;  %v1847_v50 = vpack.c.bf16 %v1781_v0, %v1778_v54  ;;  %v4819_v40 = vld [vmem:[#allocation71_spill] sm:$0xff]  ;;  %v4820_v58 = vld [vmem:[#allocation73_spill] sm:$0xff] }
 0x1b9   :  { %v4508_v4 = vpop.eup %3534  ;;  %v1675_v51 = vmul.f32 %v3533_v60, %v4817_v30  ;;  %3560 = vpow2.f32 %v2710_v20  ;;  %3067 = vmatprep.mubr.bf16.mxu0 %v1840_v15  ;;  %v1689_v47 = vmul.f32 %v4470_v27, %v4818_v19  ;;  %v1691_v20 = vmul.f32 %v4476_v34, %v4819_v40 }
 0x1ba   :  { %v3537_v31 = vpop.eup %3536  ;;  %3562 = vpow2.f32 %v2713_v52  ;;  %v1848_v7 = vpack.c.bf16 %v1782_v18, %v1779_v9  ;;  %v993_v56 = vpop.f32.mrf.mxu0  ;;  %v1768_v33 = vmul.f32 %v1672_v5, %v4422_v6  ;;  %v1692_v21 = vmul.f32 %v3523_v42, %v4820_v58  ;;  %v4822_v5 = vld [vmem:[#allocation55_spill] sm:$0xff] }
 0x1bb   :  { %v3539_v8 = vpop.eup %3538  ;;  %v1390_v61 = vadd.f32 1.0, %v3537_v31  ;;  %3564 = vpow2.f32 %v2716_v13  ;;  %v1771_v22 = vmul.f32 %v1675_v51, %v4439_v16  ;;  %v4821_v16 = vld [vmem:[#allocation68_spill] sm:$0xff]  ;;  %v1787_v30 = vmul.f32 %v1691_v20, %v4822_v5 }
 0x1bc   :  { %v3541_v2 = vpop.eup %3540  ;;  %v1393_v43 = vadd.f32 1.0, %v3539_v8  ;;  %3566 = vpow2.f32 %v2719_v11  ;;  %2164 = vmatprep.mubr.bf16.mxu1 %v1848_v7  ;;  %v4518_v52 = vpop.f32.mrf.mxu0  ;;  %v1688_v13 = vmul.f32 %v4462_v41, %v4821_v16  ;;  %v1785_v11 = vmul.f32 %v1689_v47, %v993_v56  ;;  %v4824_v47 = vld [vmem:[#allocation50_spill] sm:$0xff]  ;;  %v4827_v16 = vld [vmem:[#allocation80_spill] sm:$0xff] }
 0x1bd   :  { %v3543_v0 = vpop.eup %3542  ;;  %3568 = vrcp.f32 %v1390_v61  ;;  %v1396_v54 = vadd.f32 1.0, %v3541_v2  ;;  %v1843_v6 = vpack.c.bf16 %v1771_v22, %v1768_v33  ;;  %v4823_v61 = vld [vmem:[#allocation86_spill] sm:$0xff]  ;;  %v1425_v40 = vadd.f32 1.0, %v4824_v47 }
 0x1be   :  { %v3545_v15 = vpop.eup %3544  ;;  %3570 = vrcp.f32 %v1393_v43  ;;  %v1399_v27 = vadd.f32 1.0, %v3543_v0  ;;  %v997_v60 = vpop.f32.mrf.mxu0  ;;  %v1784_v33 = vmul.f32 %v1688_v13, %v4823_v61  ;;  %v1698_v13 = vmul.f32 %v4508_v4, %v4827_v16  ;;  %v4830_v4 = vld [vmem:[#allocation57_spill] sm:$0xff] }
 0x1bf   :  { %v3547_v9 = vpop.eup %3546  ;;  %3572 = vrcp.f32 %v1396_v54  ;;  %v1402_v34 = vadd.f32 1.0, %v3545_v15  ;;  %3068 = vmatmul.mubr.bf16.gmra.mxu0 %v1843_v6  ;;  %2165 = vmatmul.mubr.bf16.gmra.mxu1 %v1847_v50  ;;  %v1788_v18 = vmul.f32 %v1692_v21, %v997_v60  ;;  %v4825_v21 = vld [vmem:[#allocation76_spill] sm:$0xff]  ;;  %v4826_v6 = vld [vmem:[#allocation78_spill] sm:$0xff] }
 0x1c0   :  { %v3549_v36 = vpop.eup %3548  ;;  %3574 = vrcp.f32 %v1399_v27  ;;  %v1405_v42 = vadd.f32 1.0, %v3547_v9  ;;  %v4524_v51 = vpop.f32.mrf.mxu0  ;;  %v1850_v20 = vpack.c.bf16 %v1787_v30, %v1784_v33  ;;  %v1695_v54 = vmul.f32 %v4495_v62, %v4825_v21 }
 0x1c1   :  { %v3551_v31 = vpop.eup %3550  ;;  %3576 = vrcp.f32 %v1402_v34  ;;  %v1408_v41 = vadd.f32 1.0, %v3549_v36  ;;  %v1851_v7 = vpack.c.bf16 %v1788_v18, %v1785_v11  ;;  %v1697_v15 = vmul.f32 %v4501_v29, %v4826_v6  ;;  %v4828_v11 = vld [vmem:[#allocation51_spill] sm:$0xff]  ;;  %v4829_v36 = vld [vmem:[#allocation74_spill] sm:$0xff]  ;;  %v4834_v6 = vld [vmem:[#allocation52_spill] sm:$0xff] }
 0x1c2   :  { %v3553_v8 = vpop.eup %3552  ;;  %3578 = vrcp.f32 %v1405_v42  ;;  %v1411_v22 = vadd.f32 1.0, %v3551_v31  ;;  %v1003_v2 = vpop.f32.mrf.mxu0  ;;  %v1428_v18 = vadd.f32 1.0, %v4828_v11  ;;  %v1694_v42 = vmul.f32 %v4486_v37, %v4829_v36 }
 0x1c3   :  { %v3555_v56 = vpop.eup %3554  ;;  %3580 = vrcp.f32 %v1408_v41  ;;  %v1414_v50 = vadd.f32 1.0, %v3553_v8  ;;  %2172 = vmatprep.mubr.bf16.mxu1 %v1851_v7  ;;  %v1791_v5 = vmul.f32 %v1695_v54, %v1003_v2  ;;  %v1793_v7 = vmul.f32 %v1697_v15, %v4830_v4 }
 0x1c4   :  { %v3557_v19 = vpop.eup %3556  ;;  %3582 = vrcp.f32 %v1411_v22  ;;  %v1417_v43 = vadd.f32 1.0, %v3555_v56  ;;  %v4528_v0 = vpop.f32.mrf.mxu0  ;;  %v1431_v15 = vadd.f32 1.0, %v4834_v6 }
 0x1c5   :  { %v3559_v58 = vpop.eup %3558  ;;  %3584 = vrcp.f32 %v1414_v50  ;;  %v1420_v31 = vadd.f32 1.0, %v3557_v19  ;;  %v4831_v50 = vld [vmem:[#allocation23_spill] sm:$0xff] }
 0x1c6   :  { %v3561_v27 = vpop.eup %3560  ;;  %3586 = vrcp.f32 %v1417_v43  ;;  %v1423_v60 = vadd.f32 1.0, %v3559_v58  ;;  %v1007_v9 = vpop.f32.mrf.mxu0  ;;  %v1790_v47 = vmul.f32 %v1694_v42, %v4831_v50  ;;  %v4833_v43 = vld [vmem:[#allocation34_spill] sm:$0xff] }
 0x1c7   :  { %v3563_v34 = vpop.eup %3562  ;;  %2173 = vmatmul.mubr.bf16.gmra.mxu1 %v1850_v20  ;;  %v1794_v62 = vmul.f32 %v1698_v13, %v1007_v9  ;;  %3588 = vrcp.f32 %v1425_v40  ;;  %v1426_v8 = vadd.f32 1.0, %v3561_v27  ;;  %v4832_v20 = vld [vmem:[#allocation13_spill] sm:$0xff]  ;;  %v4835_v13 = vld [vmem:[#allocation15_spill] sm:$0xff] }
 0x1c8   :  { %v3565_v30 = vpop.eup %3564  ;;  %v1009_v29 = vpop.f32.mrf.mxu0  ;;  %3590 = vrcp.f32 %v1423_v60  ;;  %v1429_v37 = vadd.f32 1.0, %v3563_v34  ;;  %v1701_v19 = vmul.f32 %v4833_v43, %v4832_v20  ;;  %v1853_v16 = vpack.c.bf16 %v1793_v7, %v1790_v47  ;;  %v4836_v27 = vld [vmem:[#allocation37_spill] sm:$0xff] }
 0x1c9   :  { %v3567_v41 = vpop.eup %3566  ;;  %v1854_v61 = vpack.c.bf16 %v1794_v62, %v1791_v5  ;;  %3592 = vrcp.f32 %v1428_v18  ;;  %v1704_v60 = vmul.f32 %v4836_v27, %v4835_v13  ;;  %v4842_v27 = vld [vmem:[#allocation29_spill] sm:$0xff] }
 0x1ca   :  { %v3569_v33 = vpop.eup %3568  ;;  %v1013_v22 = vpop.f32.mrf.mxu0  ;;  %3594 = vrcp.f32 %v1420_v31 }
 0x1cb   :  { %v3571_v56 = vpop.eup %3570  ;;  %2180 = vmatprep.mubr.bf16.mxu1 %v1854_v61  ;;  %v1678_v58 = vmul.f32 %v3569_v33, %v4798_v49  ;;  %3596 = vrcp.f32 %v1426_v8  ;;  %v1797_v5 = vmul.f32 %v1701_v19, %v1013_v22  ;;  %v4837_v61 = vld [vmem:[#allocation53_spill] sm:$0xff]  ;;  %v1432_v33 = vadd.f32 1.0, %v3565_v30 }
 0x1cc   :  { %v3573_v2 = vpop.eup %3572  ;;  %v1681_v40 = vmul.f32 %v3571_v56, %v4182_v10  ;;  %v1015_v21 = vpop.f32.mrf.mxu0  ;;  %3598 = vrcp.f32 %v1429_v37 }
 0x1cd   :  { %v3575_v54 = vpop.eup %3574  ;;  %v1684_v34 = vmul.f32 %v3573_v2, %v4203_v59  ;;  %v1774_v18 = vmul.f32 %v1678_v58, %v4455_v46  ;;  %3600 = vrcp.f32 %v1431_v15  ;;  %v4839_v58 = vld [vmem:[#allocation41_spill] sm:$0xff] }
 0x1ce   :  { %v3577_v9 = vpop.eup %3576  ;;  %v1687_v11 = vmul.f32 %v3575_v54, %v4229_v44  ;;  %v1777_v49 = vmul.f32 %v1681_v40, %v4474_v17  ;;  %v1017_v10 = vpop.f32.mrf.mxu0  ;;  %v1434_v17 = vadd.f32 1.0, %v4837_v61  ;;  %v4841_v54 = vld [vmem:[#allocation49_spill] sm:$0xff] }
 0x1cf   :  { %v3579_v36 = vpop.eup %3578  ;;  %v1690_v42 = vmul.f32 %v3577_v9, %v4243_v28  ;;  %2181 = vmatmul.mubr.bf16.gmra.mxu1 %v1853_v16  ;;  %v1800_v62 = vmul.f32 %v1704_v60, %v1017_v10  ;;  %v1780_v59 = vmul.f32 %v1684_v34, %v4490_v32  ;;  %v1435_v32 = vadd.f32 1.0, %v3567_v41  ;;  %v4843_v60 = vld [vmem:[#allocation40_spill] sm:$0xff] }
 0x1d0   :  { %v3581_v31 = vpop.eup %3580  ;;  %v1693_v4 = vmul.f32 %v3579_v36, %v4264_v24  ;;  %v1846_v7 = vpack.c.bf16 %v1777_v49, %v1774_v18  ;;  %v1783_v44 = vmul.f32 %v1687_v11, %v4506_v12  ;;  %v1019_v8 = vpop.f32.mrf.mxu0  ;;  %3602 = vrcp.f32 %v1434_v17 }
 0x1d1   :  { %v3583_v46 = vpop.eup %3582  ;;  %v1857_v56 = vpack.c.bf16 %v1800_v62, %v1797_v5  ;;  %v1786_v47 = vmul.f32 %v1690_v42, %v4518_v52  ;;  %v1696_v12 = vmul.f32 %v3581_v31, %v4270_v38  ;;  %3604 = vrcp.f32 %v1432_v33 }
 0x1d2   :  { %v3585_v50 = vpop.eup %3584  ;;  %v1699_v28 = vmul.f32 %v3583_v46, %v4283_v1  ;;  %3071 = vmatprep.mubr.bf16.mxu0 %v1846_v7  ;;  %v1849_v22 = vpack.c.bf16 %v1783_v44, %v1780_v59  ;;  %v1789_v24 = vmul.f32 %v1693_v4, %v4524_v51  ;;  %v1023_v37 = vpop.f32.mrf.mxu0  ;;  %v4838_v1 = vld [vmem:[#allocation17_spill] sm:$0xff]  ;;  %v4840_v51 = vld [vmem:[#allocation19_spill] sm:$0xff]  ;;  %3606 = vrcp.f32 %v1435_v32  ;;  %v4846_v44 = vld [vmem:[#allocation24_spill] sm:$0xff] }
 0x1d3   :  { %v3587_v2 = vpop.eup %3586  ;;  %2188 = vmatprep.mubr.bf16.mxu1 %v1857_v56  ;;  %v1707_v40 = vmul.f32 %v4839_v58, %v4838_v1  ;;  %v1702_v52 = vmul.f32 %v3585_v50, %v4805_v53  ;;  %v1710_v6 = vmul.f32 %v4841_v54, %v4840_v51  ;;  %v1792_v41 = vmul.f32 %v1696_v12, %v4528_v0  ;;  %v4845_v7 = vld [vmem:[#allocation21_spill] sm:$0xff]  ;;  %v4851_v51 = vld [vmem:[#allocation12_spill] sm:$0xff] }
 0x1d4   :  { %v1705_v20 = vmul.f32 %v3587_v2, %v4807_v63  ;;  %3072 = vmatmul.mubr.bf16.gmra.mxu0 %v1849_v22  ;;  %v1852_v30 = vpack.c.bf16 %v1789_v24, %v1786_v47  ;;  %v1795_v43 = vmul.f32 %v1699_v28, %v1009_v29  ;;  %v1025_v19 = vpop.f32.mrf.mxu0  ;;  %v3589_v15 = vpop.eup %3588  ;;  %v4844_v9 = vpack.c.bf16 %v4842_v27, %v4843_v60 }
 0x1d5   :  { %v3591_v16 = vpop.eup %3590  ;;  %v1798_v29 = vmul.f32 %v1702_v52, %v1015_v21  ;;  %v1803_v13 = vmul.f32 %v1707_v40, %v1023_v37  ;;  %v1713_v59 = vmul.f32 %v3589_v15, %v4845_v7  ;;  %v4847_v56 = vpack.c.bf16 %v4381_v14, %v4385_v26  ;;  %v4849_v26 = vld [vmem:[#allocation30_spill] sm:$0xff]  ;;  %v4850_v52 = vld [vmem:[#allocation32_spill] sm:$0xff] }
 0x1d6   :  { %3075 = vmatprep.mubr.bf16.mxu0 %v1852_v30  ;;  %v1801_v38 = vmul.f32 %v1705_v20, %v1019_v8  ;;  %v1027_v63 = vpop.f32.mrf.mxu0  ;;  %v3593_v53 = vpop.eup %3592  ;;  %v1855_v11 = vpack.c.bf16 %v1795_v43, %v1792_v41  ;;  %v1711_v0 = vmul.f32 %v3591_v16, %v4811_v48  ;;  %v4848_v30 = vld [vmem:[#allocation27_spill] sm:$0xff]  ;;  %v4852_v54 = vpack.c.bf16 %v4850_v52, %v4851_v51 }
 0x1d7   :  { %2189 = vmatmul.mubr.bf16.gmra.mxu1 %v4844_v9  ;;  %v1806_v34 = vmul.f32 %v1710_v6, %v1027_v63  ;;  %v3595_v49 = vpop.eup %3594  ;;  %v1716_v8 = vmul.f32 %v3593_v53, %v4846_v44 }
 0x1d8   :  { %v1029_v18 = vpop.f32.mrf.mxu0  ;;  %v1858_v10 = vpack.c.bf16 %v1801_v38, %v1798_v29  ;;  %v3597_v42 = vpop.eup %3596  ;;  %v1708_v21 = vmul.f32 %v3595_v49, %v4340_v45 }
 0x1d9   :  { %v1860_v36 = vpack.c.bf16 %v1806_v34, %v1803_v13  ;;  %v3599_v62 = vpop.eup %3598  ;;  %v1807_v31 = vmul.f32 %v1711_v0, %v1029_v18  ;;  %v1714_v17 = vmul.f32 %v3597_v42, %v4383_v23 }
 0x1da   :  { %v1033_v5 = vpop.f32.mrf.mxu0  ;;  %v1804_v46 = vmul.f32 %v1708_v21, %v1025_v19  ;;  %v1717_v33 = vmul.f32 %v3599_v62, %v4399_v39  ;;  %v3601_v50 = vpop.eup %3600 }
 0x1db   :  { %2196 = vmatprep.mubr.bf16.mxu1 %v1860_v36  ;;  %v1809_v48 = vmul.f32 %v1713_v59, %v1033_v5  ;;  %v1719_v43 = vmul.f32 %v3601_v50, %v4848_v30 }
 0x1dc   :  { %3076 = vmatmul.mubr.bf16.gmra.mxu0 %v1855_v11  ;;  %v1035_v4 = vpop.f32.mrf.mxu0  ;;  %v1861_v28 = vpack.c.bf16 %v1807_v31, %v1804_v46 }
 0x1dd   :  { %3079 = vmatprep.mubr.bf16.mxu0 %v1858_v10  ;;  %v1810_v47 = vmul.f32 %v1714_v17, %v1035_v4  ;;  %v3603_v2 = vpop.eup %3602 }
 0x1de   :  { %v1037_v61 = vpop.f32.mrf.mxu0  ;;  %v3605_v12 = vpop.eup %3604  ;;  %v1722_v14 = vmul.f32 %v3603_v2, %v4849_v26 }
 0x1df   :  { %2197 = vmatmul.mubr.bf16.gmra.mxu1 %v4847_v56  ;;  %v1812_v45 = vmul.f32 %v1716_v8, %v1037_v61  ;;  %v3607_v23 = vpop.eup %3606  ;;  %v1720_v1 = vmul.f32 %v3605_v12, %v4414_v57 }
 0x1e0   :  { %v1039_v22 = vpop.f32.mrf.mxu0  ;;  %v1723_v58 = vmul.f32 %v3607_v23, %v4431_v55 }
 0x1e1   :  { %v1863_v24 = vpack.c.bf16 %v1812_v45, %v1809_v48  ;;  %v1813_v37 = vmul.f32 %v1717_v33, %v1039_v22 }
 0x1e2   :  { %v1043_v32 = vpop.f32.mrf.mxu0 }
 0x1e3   :  { %v1864_v20 = vpack.c.bf16 %v1813_v37, %v1810_v47  ;;  %2204 = vmatprep.mubr.bf16.mxu1 %v1863_v24  ;;  %v1815_v40 = vmul.f32 %v1719_v43, %v1043_v32 }
 0x1e4   :  { %3080 = vmatmul.mubr.bf16.gmra.mxu0 %v1861_v28  ;;  %v1045_v39 = vpop.f32.mrf.mxu0 }
 0x1e5   :  { %3083 = vmatprep.mubr.bf16.mxu0 %v1864_v20  ;;  %v1816_v41 = vmul.f32 %v1720_v1, %v1045_v39 }
 0x1e6   :  { %v1047_v19 = vpop.f32.mrf.mxu0 }
 0x1e7   :  { %2205 = vmatmul.mubr.bf16.gmra.mxu1 %v4852_v54  ;;  %v1818_v6 = vmul.f32 %v1722_v14, %v1047_v19 }
 0x1e8   :  { %v1049_v15 = vpop.f32.mrf.mxu0 }
 0x1e9   :  { %v1866_v38 = vpack.c.bf16 %v1818_v6, %v1815_v40  ;;  %v1819_v63 = vmul.f32 %v1723_v58, %v1049_v15 }
 0x1eb   :  { %v1867_v16 = vpack.c.bf16 %v1819_v63, %v1816_v41  ;;  %2212 = vmatprep.mubr.bf16.mxu1 %v1866_v38 }
 0x1ed   :  { %3084 = vmatmul.mubr.bf16.gmra.mxu0 %v1867_v16 }
 0x1ef   :  { %2213 = vmatmul.mubr.bf16.gmra.mxu1 %v1865_v25 }
 0x234   :  { %v2919_v57 = vpop.f32.mrf.mxu1 }
 0x236   :  { %v2920_v29 = vpop.f32.mrf.mxu1 }
 0x237   :  { %v2921_v10 = vadd.f32 %v2920_v29, %v2919_v57 }
 0x238   :  { %v2922_v55 = vpop.f32.mrf.mxu1 }
 0x23a   :  { %v2923_v13 = vpop.f32.mrf.mxu1 }
 0x23b   :  { %v2924_v36 = vadd.f32 %v2923_v13, %v2922_v55 }
 0x23c   :  { %v2925_v27 = vpop.f32.mrf.mxu1 }
 0x23d   :  { %v3057_v60 = vpop.f32.mrf.mxu0 }
 0x23e   :  { %v2926_v9 = vpop.f32.mrf.mxu1 }
 0x23f   :  { %v2255_v34 = vpop.f32.mrf.mxu0  ;;  %v2927_v11 = vadd.f32 %v2926_v9, %v2925_v27 }
 0x240   :  { %v2928_v53 = vpop.f32.mrf.mxu1  ;;  %v2256_v3 = vadd.f32 %v2921_v10, %v2255_v34 }
 0x241   :  { %v3058_v18 = vpop.f32.mrf.mxu0  ;;  %v2264_v62 = vadd.f32 %v3057_v60, %v2927_v11 }
 0x242   :  { %v2929_v49 = vpop.f32.mrf.mxu1 }
 0x243   :  { %v2930_v42 = vadd.f32 %v2929_v49, %v2928_v53  ;;  %v2258_v0 = vpop.f32.mrf.mxu0 }
 0x244   :  { %v2931_v5 = vpop.f32.mrf.mxu1  ;;  %v2259_v25 = vadd.f32 %v2924_v36, %v2258_v0 }
 0x245   :  { %v2267_v35 = vadd.f32 %v3058_v18, %v2930_v42 }
 0x246   :  { %v2932_v21 = vpop.f32.mrf.mxu1  ;;  %v2811_v4 = vpack.c.bf16 %v2259_v25, %v2256_v3 }
 0x247   :  { %v2816_v31 = vpack.c.bf16 %v2267_v35, %v2264_v62  ;;  %v2933_v47 = vadd.f32 %v2932_v21, %v2931_v5 }
 0x248   :  { %v2934_v7 = vpop.f32.mrf.mxu1  ;;  %2812 = vst [vmem:[#allocation8] sm:$0xff] %v2811_v4  }
 0x249   :  { %2888 = vst [vmem:[#allocation8 + $0x8] sm:$0xff] %v2816_v31  }
 0x24a   :  { %v2935_v59 = vpop.f32.mrf.mxu1 }
 0x24b   :  { %v2936_v24 = vadd.f32 %v2935_v59, %v2934_v7 }
 0x24e   :  { %v2937_v44 = vpop.f32.mrf.mxu1 }
 0x250   :  { %v2938_v8 = vpop.f32.mrf.mxu1 }
 0x251   :  { %v2939_v48 = vadd.f32 %v2938_v8, %v2937_v44 }
 0x252   :  { %v2940_v46 = vpop.f32.mrf.mxu1 }
 0x254   :  { %v2941_v61 = vpop.f32.mrf.mxu1 }
 0x255   :  { %v2942_v56 = vadd.f32 %v2941_v61, %v2940_v46 }
 0x256   :  { %v2943_v17 = vpop.f32.mrf.mxu1 }
 0x257   :  { %v3061_v33 = vpop.f32.mrf.mxu0 }
 0x258   :  { %v2944_v45 = vpop.f32.mrf.mxu1  ;;  %v2280_v37 = vadd.f32 %v3061_v33, %v2939_v48 }
 0x259   :  { %v2271_v50 = vpop.f32.mrf.mxu0  ;;  %v2945_v55 = vadd.f32 %v2944_v45, %v2943_v17 }
 0x25a   :  { %v2946_v28 = vpop.f32.mrf.mxu1  ;;  %v2272_v20 = vadd.f32 %v2933_v47, %v2271_v50 }
 0x25b   :  { %v3062_v22 = vpop.f32.mrf.mxu0 }
 0x25c   :  { %v2283_v2 = vadd.f32 %v3062_v22, %v2942_v56  ;;  %v2947_v32 = vpop.f32.mrf.mxu1 }
 0x25d   :  { %v2274_v12 = vpop.f32.mrf.mxu0  ;;  %v2948_v13 = vadd.f32 %v2947_v32, %v2946_v28 }
 0x25e   :  { %v2826_v23 = vpack.c.bf16 %v2283_v2, %v2280_v37  ;;  %v2275_v39 = vadd.f32 %v2936_v24, %v2274_v12 }
 0x25f   :  { %v2949_v30 = vpop.f32.mrf.mxu1 }
 0x260   :  { %2890 = vst [vmem:[#allocation8 + $0x18] sm:$0xff] %v2826_v23   ;;  %v2821_v43 = vpack.c.bf16 %v2275_v39, %v2272_v20 }
 0x261   :  { %v2950_v26 = vpop.f32.mrf.mxu1 }
 0x262   :  { %2889 = vst [vmem:[#allocation8 + $0x10] sm:$0xff] %v2821_v43   ;;  %v2951_v41 = vadd.f32 %v2950_v26, %v2949_v30 }
 0x263   :  { %v2952_v14 = vpop.f32.mrf.mxu1 }
 0x265   :  { %v2953_v19 = vpop.f32.mrf.mxu1 }
 0x266   :  { %v2954_v38 = vadd.f32 %v2953_v19, %v2952_v14 }
 0x267   :  { %v2955_v1 = vpop.f32.mrf.mxu1 }
 0x269   :  { %v2956_v58 = vpop.f32.mrf.mxu1 }
 0x26a   :  { %v2957_v31 = vadd.f32 %v2956_v58, %v2955_v1 }
 0x26b   :  { %v2958_v40 = vpop.f32.mrf.mxu1 }
 0x26d   :  { %v2959_v52 = vpop.f32.mrf.mxu1 }
 0x26e   :  { %v2960_v4 = vadd.f32 %v2959_v52, %v2958_v40 }
 0x26f   :  { %v2961_v51 = vpop.f32.mrf.mxu1 }
 0x271   :  { %v2962_v54 = vpop.f32.mrf.mxu1 }
 0x272   :  { %v2963_v5 = vadd.f32 %v2962_v54, %v2961_v51 }
 0x273   :  { %v3065_v6 = vpop.f32.mrf.mxu0  ;;  %v2964_v15 = vpop.f32.mrf.mxu1 }
 0x274   :  { %v2296_v27 = vadd.f32 %v3065_v6, %v2951_v41 }
 0x275   :  { %v2287_v63 = vpop.f32.mrf.mxu0  ;;  %v2965_v16 = vpop.f32.mrf.mxu1 }
 0x276   :  { %v2288_v53 = vadd.f32 %v2945_v55, %v2287_v63  ;;  %v2966_v62 = vadd.f32 %v2965_v16, %v2964_v15 }
 0x277   :  { %v3066_v57 = vpop.f32.mrf.mxu0  ;;  %v2967_v29 = vpop.f32.mrf.mxu1 }
 0x278   :  { %v2299_v60 = vadd.f32 %v3066_v57, %v2954_v38 }
 0x279   :  { %v2290_v9 = vpop.f32.mrf.mxu0  ;;  %v2968_v34 = vpop.f32.mrf.mxu1 }
 0x27a   :  { %v2836_v11 = vpack.c.bf16 %v2299_v60, %v2296_v27  ;;  %v2291_v18 = vadd.f32 %v2948_v13, %v2290_v9  ;;  %v2969_v39 = vadd.f32 %v2968_v34, %v2967_v29 }
 0x27b   :  { %v2970_v49 = vpop.f32.mrf.mxu1 }
 0x27c   :  { %2892 = vst [vmem:[#allocation8 + $0x28] sm:$0xff] %v2836_v11   ;;  %v2831_v10 = vpack.c.bf16 %v2291_v18, %v2288_v53 }
 0x27d   :  { %v2971_v36 = vpop.f32.mrf.mxu1 }
 0x27e   :  { %2891 = vst [vmem:[#allocation8 + $0x20] sm:$0xff] %v2831_v10   ;;  %v2972_v30 = vadd.f32 %v2971_v36, %v2970_v49 }
 0x27f   :  { %v3069_v42 = vpop.f32.mrf.mxu0  ;;  %v2973_v0 = vpop.f32.mrf.mxu1 }
 0x280   :  { %v2312_v7 = vadd.f32 %v3069_v42, %v2963_v5 }
 0x281   :  { %v2303_v3 = vpop.f32.mrf.mxu0  ;;  %v2974_v35 = vpop.f32.mrf.mxu1 }
 0x282   :  { %v2304_v46 = vadd.f32 %v2957_v31, %v2303_v3  ;;  %v2975_v37 = vadd.f32 %v2974_v35, %v2973_v0 }
 0x283   :  { %v3070_v25 = vpop.f32.mrf.mxu0  ;;  %v2976_v21 = vpop.f32.mrf.mxu1 }
 0x284   :  { %v2315_v59 = vadd.f32 %v3070_v25, %v2966_v62 }
 0x285   :  { %v2306_v44 = vpop.f32.mrf.mxu0  ;;  %v2977_v8 = vpop.f32.mrf.mxu1 }
 0x286   :  { %v2846_v61 = vpack.c.bf16 %v2315_v59, %v2312_v7  ;;  %v2307_v17 = vadd.f32 %v2960_v4, %v2306_v44  ;;  %v2978_v2 = vadd.f32 %v2977_v8, %v2976_v21 }
 0x287   :  { %v2979_v33 = vpop.f32.mrf.mxu1 }
 0x288   :  { %2894 = vst [vmem:[#allocation8 + $0x38] sm:$0xff] %v2846_v61   ;;  %v2841_v48 = vpack.c.bf16 %v2307_v17, %v2304_v46 }
 0x289   :  { %v2980_v56 = vpop.f32.mrf.mxu1 }
 0x28a   :  { %2893 = vst [vmem:[#allocation8 + $0x30] sm:$0xff] %v2841_v48   ;;  %v2981_v57 = vadd.f32 %v2980_v56, %v2979_v33 }
 0x28b   :  { %v2982_v45 = vpop.f32.mrf.mxu1 }
 0x28d   :  { %v2983_v50 = vpop.f32.mrf.mxu1 }
 0x28e   :  { %v2984_v29 = vadd.f32 %v2983_v50, %v2982_v45 }
 0x28f   :  { %v2985_v28 = vpop.f32.mrf.mxu1 }
 0x291   :  { %v2986_v22 = vpop.f32.mrf.mxu1 }
 0x292   :  { %v2987_v6 = vadd.f32 %v2986_v22, %v2985_v28 }
 0x293   :  { %v2988_v47 = vpop.f32.mrf.mxu1 }
 0x294   :  { %v3073_v24 = vpop.f32.mrf.mxu0 }
 0x295   :  { %v2989_v32 = vpop.f32.mrf.mxu1  ;;  %v2328_v43 = vadd.f32 %v3073_v24, %v2975_v37 }
 0x296   :  { %v2319_v12 = vpop.f32.mrf.mxu0  ;;  %v2990_v15 = vadd.f32 %v2989_v32, %v2988_v47 }
 0x297   :  { %v2991_v20 = vpop.f32.mrf.mxu1  ;;  %v2320_v1 = vadd.f32 %v2969_v39, %v2319_v12 }
 0x298   :  { %v3074_v23 = vpop.f32.mrf.mxu0 }
 0x299   :  { %v2331_v26 = vadd.f32 %v3074_v23, %v2978_v2  ;;  %v2992_v14 = vpop.f32.mrf.mxu1 }
 0x29a   :  { %v2322_v19 = vpop.f32.mrf.mxu0  ;;  %v2993_v3 = vadd.f32 %v2992_v14, %v2991_v20 }
 0x29b   :  { %v2856_v58 = vpack.c.bf16 %v2331_v26, %v2328_v43  ;;  %v2323_v40 = vadd.f32 %v2972_v30, %v2322_v19  ;;  %v2994_v52 = vpop.f32.mrf.mxu1 }
 0x29c   :  { %v3077_v51 = vpop.f32.mrf.mxu0 }
 0x29d   :  { %2896 = vst [vmem:[#allocation8 + $0x48] sm:$0xff] %v2856_v58   ;;  %v2851_v54 = vpack.c.bf16 %v2323_v40, %v2320_v1  ;;  %v2995_v41 = vpop.f32.mrf.mxu1  ;;  %v2344_v55 = vadd.f32 %v3077_v51, %v2987_v6 }
 0x29e   :  { %v2335_v38 = vpop.f32.mrf.mxu0  ;;  %v2996_v35 = vadd.f32 %v2995_v41, %v2994_v52 }
 0x29f   :  { %2895 = vst [vmem:[#allocation8 + $0x40] sm:$0xff] %v2851_v54   ;;  %v2997_v63 = vpop.f32.mrf.mxu1  ;;  %v2336_v9 = vadd.f32 %v2981_v57, %v2335_v38 }
 0x2a0   :  { %v3078_v16 = vpop.f32.mrf.mxu0 }
 0x2a1   :  { %v2347_v13 = vadd.f32 %v3078_v16, %v2990_v15  ;;  %v2998_v27 = vpop.f32.mrf.mxu1 }
 0x2a2   :  { %v2338_v60 = vpop.f32.mrf.mxu0  ;;  %v2999_v10 = vadd.f32 %v2998_v27, %v2997_v63 }
 0x2a3   :  { %v2866_v34 = vpack.c.bf16 %v2347_v13, %v2344_v55  ;;  %v2339_v53 = vadd.f32 %v2984_v29, %v2338_v60  ;;  %v3000_v11 = vpop.f32.mrf.mxu1 }
 0x2a4   :  { %v3081_v18 = vpop.f32.mrf.mxu0 }
 0x2a5   :  { %2898 = vst [vmem:[#allocation8 + $0x58] sm:$0xff] %v2866_v34   ;;  %v2861_v49 = vpack.c.bf16 %v2339_v53, %v2336_v9  ;;  %v3001_v36 = vpop.f32.mrf.mxu1  ;;  %v2360_v25 = vadd.f32 %v3081_v18, %v2999_v10 }
 0x2a6   :  { %v2351_v42 = vpop.f32.mrf.mxu0  ;;  %v3002_v0 = vadd.f32 %v3001_v36, %v3000_v11 }
 0x2a7   :  { %2897 = vst [vmem:[#allocation8 + $0x50] sm:$0xff] %v2861_v49   ;;  %v3003_v5 = vpop.f32.mrf.mxu1  ;;  %v2352_v7 = vadd.f32 %v2993_v3, %v2351_v42 }
 0x2a8   :  { %v3082_v62 = vpop.f32.mrf.mxu0 }
 0x2a9   :  { %v2363_v21 = vadd.f32 %v3082_v62, %v3002_v0  ;;  %v3004_v31 = vpop.f32.mrf.mxu1 }
 0x2aa   :  { %v2354_v4 = vpop.f32.mrf.mxu0  ;;  %v3005_v50 = vadd.f32 %v3004_v31, %v3003_v5 }
 0x2ab   :  { %v2876_v59 = vpack.c.bf16 %v2363_v21, %v2360_v25  ;;  %v2355_v44 = vadd.f32 %v2996_v35, %v2354_v4  ;;  %v3006_v8 = vpop.f32.mrf.mxu1 }
 0x2ad   :  { %2900 = vst [vmem:[#allocation8 + $0x68] sm:$0xff] %v2876_v59   ;;  %v2871_v46 = vpack.c.bf16 %v2355_v44, %v2352_v7  ;;  %v3007_v61 = vpop.f32.mrf.mxu1  ;;  %v3085_v17 = vpop.f32.mrf.mxu0 }
 0x2ae   :  { %v3008_v28 = vadd.f32 %v3007_v61, %v3006_v8 }
 0x2af   :  { %2899 = vst [vmem:[#allocation8 + $0x60] sm:$0xff] %v2871_v46   ;;  %v3009_v33 = vpop.f32.mrf.mxu1  ;;  %v2367_v48 = vpop.f32.mrf.mxu0 }
 0x2b0   :  { %v2368_v37 = vadd.f32 %v3005_v50, %v2367_v48 }
 0x2b1   :  { %v3010_v56 = vpop.f32.mrf.mxu1  ;;  %v3086_v45 = vpop.f32.mrf.mxu0 }
 0x2b2   :  { %v3011_v24 = vadd.f32 %v3010_v56, %v3009_v33 }
 0x2b3   :  { %v3012_v22 = vpop.f32.mrf.mxu1  ;;  %v2370_v47 = vpop.f32.mrf.mxu0 }
 0x2b4   :  { %v2371_v2 = vadd.f32 %v3008_v28, %v2370_v47  ;;  %v2376_v23 = vadd.f32 %v3085_v17, %v3011_v24 }
 0x2b5   :  { %v3013_v32 = vpop.f32.mrf.mxu1 }
 0x2b6   :  { %v3014_v12 = vadd.f32 %v3013_v32, %v3012_v22  ;;  %v2881_v20 = vpack.c.bf16 %v2371_v2, %v2368_v37 }
 0x2b8   :  { %v2379_v39 = vadd.f32 %v3086_v45, %v3014_v12  ;;  %2901 = vst [vmem:[#allocation8 + $0x70] sm:$0xff] %v2881_v20  }
 0x2ba   :  { %v2886_v30 = vpack.c.bf16 %v2379_v39, %v2376_v23 }
 0x2bc   :  { %2902 = vst [vmem:[#allocation8 + $0x78] sm:$0xff] %v2886_v30  }
 0x2bd   :  { %3679 = shalt.err (!%p3676_p5)
}
 0x2be   :  { %2553 = dma.vmem_to_hbm [thread:$0]  %s2548_s2, 2048, %s4599_s3, [#allocation4], %s3698_s22, %s3698_s22, %s3699_s23  }
 0x2bf   :  { %3692 = dma.done.wait [#allocation4], 2048  }
 0x2c0   :  { %3693 = vsyncadd [#allocation4], 4294965248 }
 0x2c1   :  { %2557 = vsyncpa [#allocation3], 1 }
 0x2c2   :  { %2558 = vsyncpa [#allocation6], 1 }
 0x2c3   :  { %2559 = vsyncpa [#allocation4], 1 }

</bundles_post_ra>
